<compile_context>
chip_gen: v6e
topology: v6e:2x2x1
jax: 0.10.0
libtpu: 0.0.40
codegen_flags: <defaults>
</compile_context>

<pallas_src>
import functools

import jax
import jax.numpy as jnp
from jax.experimental import pallas as pl
from jax.experimental.pallas import tpu as pltpu

EPS = 1e-5          # nn.LayerNorm default eps
NEG_INF = -1e9      # additive mask for cross-(batch,head) score entries


# ----------------------------- in-kernel helpers -----------------------------

def _layernorm(x, w, b):
    # x: (R, D) fp32, w/b: (1, D) fp32 -- biased variance, matching nn.LayerNorm
    mean = jnp.mean(x, axis=-1, keepdims=True)
    var = jnp.mean(jnp.square(x - mean), axis=-1, keepdims=True)
    return (x - mean) * jax.lax.rsqrt(var + EPS) * w + b


# --------------------------------- kernel ------------------------------------

def encoder_kernel(x_ref, p_split_ref, bias_ref,
                   ln1w_ref, ln1b_ref, ln1vw_ref, ln1vb_ref,
                   wq_ref, wk_ref, wv_ref, wp_ref, bp_ref,
                   ln2w_ref, ln2b_ref,
                   w1_ref, b1_ref, w2_ref, b2_ref,
                   ln3w_ref, ln3b_ref,
                   o_ref,
                   *, num_heads, head_dim, seq_len, batch, scale):
    H, hd, L, B = num_heads, head_dim, seq_len, batch
    D = H * hd
    bf16, f32 = jnp.bfloat16, jnp.float32

    # Layer 0: seed the resident activation block with the encoder input.
    @pl.when(pl.program_id(0) == 0)
    def _():
        o_ref[...] = x_ref[...]

    x = o_ref[...]                                         # (B*L, D) fp32 residual

    # ---------------- attention ----------------
    xn = _layernorm(x, ln1w_ref[0], ln1b_ref[0])           # norm1 (q and k path)
    xnv = _layernorm(x, ln1vw_ref[0], ln1vb_ref[0])        # norm1_v (v path)
    xn_b, xnv_b = xn.astype(bf16), xnv.astype(bf16)

    q2d = jnp.dot(xn_b, wq_ref[0], preferred_element_type=f32)     # (B*L, D)
    k2d = jnp.dot(xn_b, wk_ref[0], preferred_element_type=f32)
    v2d = jnp.dot(xnv_b, wv_ref[0], preferred_element_type=f32)

    # torch's raw `.view(B, H, L, hd)` head split == a fixed row gather of
    # lane-chunked rows; done as one constant permutation matmul (no lane-dim
    # reshapes / transposes inside the kernel).
    p_split = p_split_ref[...]                             # (B*H*L, H*B*L) fp32 0/1

    def head_split(t2d):
        chunks = jnp.concatenate(
            [t2d[:, c * hd:(c + 1) * hd] for c in range(H)], axis=0)   # (H*B*L, hd)
        return jnp.dot(p_split, chunks, preferred_element_type=f32)    # (B*H*L, hd)

    fq = head_split(q2d).astype(bf16)                      # rows = (b, h, l) flat
    fk = head_split(k2d).astype(bf16)
    fv = head_split(v2d).astype(bf16)

    # Scores for all (batch, head) pairs at once; the additive bias keeps the
    # softmax block-diagonal (one LxL block per (batch, head)).
    s = jax.lax.dot_general(fq, fk, (((1,), (1,)), ((), ())),
                            preferred_element_type=f32)    # (BHL, BHL)
    s = s * jnp.float32(scale) + bias_ref[...]
    s = s - jnp.max(s, axis=-1, keepdims=True)
    p = jnp.exp(s)
    denom = jnp.sum(p, axis=-1, keepdims=True)
    # normalize after the PV matmul (mathematically identical to softmax @ v)
    o_att = jnp.dot(p.astype(bf16), fv, preferred_element_type=f32) / denom  # (BHL, hd)

    # Merge heads (.transpose(1,2).reshape(B, L, D)) + output projection, fused:
    # per-head row-slice of Wp, accumulated in fp32.
    wp = wp_ref[0]                                          # (D, D) bf16
    proj = None
    for h in range(H):
        oh = jnp.concatenate(
            [o_att[b * H * L + h * L: b * H * L + (h + 1) * L, :] for b in range(B)],
            axis=0).astype(bf16)                            # (B*L, hd)
        contrib = jnp.dot(oh, wp[h * hd:(h + 1) * hd, :],
                          preferred_element_type=f32)       # (B*L, D)
        proj = contrib if proj is None else proj + contrib

    y = x + proj + bp_ref[0]                                # x = x_v + attn(...)

    # ---------------- MLP ----------------
    yn = _layernorm(y, ln2w_ref[0], ln2b_ref[0]).astype(bf16)
    h1 = jnp.dot(yn, w1_ref[0], preferred_element_type=f32) + b1_ref[0]
    # exact GELU (erf form), matching nn.GELU default
    h1 = 0.5 * h1 * (1.0 + jax.lax.erf(h1 * jnp.float32(0.7071067811865476)))
    m = jnp.dot(h1.astype(bf16), w2_ref[0], preferred_element_type=f32) + b2_ref[0]
    z = y + m

    o_ref[...] = _layernorm(z, ln3w_ref[0], ln3b_ref[0])    # norm3


# -------------------------------- wrapper -------------------------------------

def _make_head_split_perm(B, L, H):
    """0/1 matrix realizing torch's `.view(B, H, L, hd)` as a row gather of
    lane-chunked q/k/v rows (see head_split in the kernel)."""
    BL, HL, BHL = B * L, H * L, B * H * L
    w = jnp.arange(BHL)
    b = w // HL
    g = w % HL
    u = (g % H) * BL + b * L + g // H            # source row in the chunk-stacked matrix
    return (u[:, None] == jnp.arange(H * BL)[None, :]).astype(jnp.float32)


def _make_block_diag_bias(B, H, L):
    """Additive bias: 0 inside each (batch, head) LxL block, NEG_INF elsewhere."""
    idx = jnp.arange(B * H * L) // L
    same = idx[:, None] == idx[None, :]
    return jnp.where(same, 0.0, NEG_INF).astype(jnp.float32)


def transformer_encoder(x, stacked, num_heads):
    B, L, D = x.shape
    depth = stacked['wq'].shape[0]
    hd = D // num_heads
    Dh = stacked['w1'].shape[-1]
    BL = B * L
    BHL = B * num_heads * L

    x2d = x.reshape(BL, D)
    p_split = _make_head_split_perm(B, L, num_heads)
    bias = _make_block_diag_bias(B, num_heads, L)

    act_spec = pl.BlockSpec((BL, D), lambda l: (0, 0))

    def const2d(shape):
        return pl.BlockSpec(shape, lambda l: (0, 0))

    def perlayer(shape):
        return pl.BlockSpec((1,) + shape, lambda l: (l,) + (0,) * len(shape))

    vec, vech = (1, D), (1, Dh)
    in_specs = [
        act_spec,                                   # x2d
        const2d((BHL, BHL)),                        # head-split permutation
        const2d((BHL, BHL)),                        # block-diagonal attention bias
        perlayer(vec), perlayer(vec),               # ln1 w, b
        perlayer(vec), perlayer(vec),               # ln1_v w, b
        perlayer((D, D)), perlayer((D, D)), perlayer((D, D)),   # wq, wk, wv
        perlayer((D, D)), perlayer(vec),            # wp, bp
        perlayer(vec), perlayer(vec),               # ln2 w, b
        perlayer((D, Dh)), perlayer(vech),          # w1, b1
        perlayer((Dh, D)), perlayer(vec),           # w2, b2
        perlayer(vec), perlayer(vec),               # ln3 w, b
    ]

    kernel = functools.partial(
        encoder_kernel,
        num_heads=num_heads, head_dim=hd, seq_len=L, batch=B,
        scale=float(hd) ** -0.5)

    out2d = pl.pallas_call(
        kernel,
        grid=(depth,),
        in_specs=in_specs,
        out_specs=act_spec,
        out_shape=jax.ShapeDtypeStruct((BL, D), jnp.float32),
        compiler_params=pltpu.CompilerParams(
            dimension_semantics=("arbitrary",),     # layers are sequential
            vmem_limit_bytes=32 * 1024 * 1024),
    )(x2d, p_split, bias,
      stacked['ln1_w'], stacked['ln1_b'], stacked['ln1v_w'], stacked['ln1v_b'],
      stacked['wq'], stacked['wk'], stacked['wv'], stacked['wp'], stacked['bp'],
      stacked['ln2_w'], stacked['ln2_b'],
      stacked['w1'], stacked['b1'], stacked['w2'], stacked['b2'],
      stacked['ln3_w'], stacked['ln3_b'])
    return out2d.reshape(B, L, D)


# ------------------------------ param init ------------------------------------

def init_block_params(key, dim, mlp_ratio):
    hidden = int(dim * mlp_ratio)
    ks = jax.random.split(key, 8)

    def w(k, shape):
        return jax.random.normal(k, shape, jnp.float32) * 0.02

    ones = jnp.ones((1, dim), jnp.float32)
    zeros = jnp.zeros((1, dim), jnp.float32)
    return dict(
        ln1_w=ones, ln1_b=zeros,
        ln1v_w=ones, ln1v_b=zeros,
        wq=w(ks[0], (dim, dim)).astype(jnp.bfloat16),   # stored (in, out); q/k/v no bias
        wk=w(ks[1], (dim, dim)).astype(jnp.bfloat16),
        wv=w(ks[2], (dim, dim)).astype(jnp.bfloat16),
        wp=w(ks[3], (dim, dim)).astype(jnp.bfloat16),
        bp=w(ks[4], (1, dim)),
        ln2_w=ones, ln2_b=zeros,
        w1=w(ks[5], (dim, hidden)).astype(jnp.bfloat16),
        b1=w(ks[6], (1, hidden)),
        w2=w(ks[7], (hidden, dim)).astype(jnp.bfloat16),
        b2=jnp.zeros((1, dim), jnp.float32),
        ln3_w=ones, ln3_b=zeros,
    )


# ------------------------------ pure-JAX reference -----------------------------
# Same math as the PyTorch module (raw .view head split, per-head softmax, exact
# GELU), with matmul operands in bf16 / fp32 accumulation to mirror the kernel.

def _ref_ln(x, w, b):
    mean = jnp.mean(x, axis=-1, keepdims=True)
    var = jnp.mean(jnp.square(x - mean), axis=-1, keepdims=True)
    return (x - mean) * jax.lax.rsqrt(var + EPS) * w + b


def _ref_block(x2d, p, B, L, H):
    D = x2d.shape[-1]
    hd = D // H
    bf16, f32 = jnp.bfloat16, jnp.float32

    def mm(a, w):
        return jnp.dot(a.astype(bf16), w.astype(bf16), preferred_element_type=f32)

    xn = _ref_ln(x2d, p['ln1_w'], p['ln1_b'])
    xnv = _ref_ln(x2d, p['ln1v_w'], p['ln1v_b'])
    q = mm(xn, p['wq']).reshape(B, H, L, hd)      # torch raw `.view(B, H, L, hd)`
    k = mm(xn, p['wk']).reshape(B, H, L, hd)
    v = mm(xnv, p['wv']).reshape(B, H, L, hd)
    s = jnp.einsum('bhqd,bhkd->bhqk', q.astype(bf16), k.astype(bf16),
                   preferred_element_type=f32) * (float(hd) ** -0.5)
    s = s - jnp.max(s, axis=-1, keepdims=True)
    e = jnp.exp(s)
    denom = jnp.sum(e, axis=-1, keepdims=True)
    o = jnp.einsum('bhqk,bhkd->bhqd', e.astype(bf16), v.astype(bf16),
                   preferred_element_type=f32) / denom
    o = o.transpose(0, 2, 1, 3).reshape(B * L, D)
    y = x2d + mm(o, p['wp']) + p['bp']
    yn = _ref_ln(y, p['ln2_w'], p['ln2_b'])
    h1 = mm(yn, p['w1']) + p['b1']
    h1 = 0.5 * h1 * (1.0 + jax.lax.erf(h1 * jnp.float32(0.7071067811865476)))
    z = y + mm(h1, p['w2']) + p['b2']
    return _ref_ln(z, p['ln3_w'], p['ln3_b'])


# ---------------------------------- main ---------------------------------------

if __name__ == "__main__":
    # TransformerEncoder(depth=2, dim=32, num_heads=4, mlp_ratio=4.0, ...)
    B, L, D, H = 2, 8, 32, 4
    depth, mlp_ratio = 2, 4.0

    key = jax.random.PRNGKey(0)
    kx, kp = jax.random.split(key)
    x = jax.random.normal(kx, (B, L, D), jnp.float32)
    layer_params = [init_block_params(k, D, mlp_ratio)
                    for k in jax.random.split(kp, depth)]
    stacked = {k: jnp.stack([p[k] for p in layer_params], axis=0)
               for k in layer_params[0]}

    out = transformer_encoder(x, stacked, H)
    out = jax.block_until_ready(out)

    # reference of the same math (bf16 matmuls, fp32 accumulation)
    ref2d = x.reshape(B * L, D)
    for p in layer_params:
        ref2d = _ref_block(ref2d, p, B, L, H)
    ref = ref2d.reshape(B, L, D)

    assert out.shape == (B, L, D)
    err = float(jnp.max(jnp.abs(out - ref)))
    assert bool(jnp.allclose(out, ref, atol=2e-3, rtol=2e-3)), f"mismatch vs reference: {err}"

    print("KERNEL_OK")
</pallas_src>

<mosaic_0001>
module attributes {stable_mosaic.version = 11 : i64} {
  func.func @encoder_kernel(%arg0: i32, %arg1: memref<16x32xf32, #tpu.memory_space<vmem>>, %arg2: memref<64x64xf32, #tpu.memory_space<vmem>>, %arg3: memref<64x64xf32, #tpu.memory_space<vmem>>, %arg4: memref<1x1x32xf32, #tpu.memory_space<vmem>>, %arg5: memref<1x1x32xf32, #tpu.memory_space<vmem>>, %arg6: memref<1x1x32xf32, #tpu.memory_space<vmem>>, %arg7: memref<1x1x32xf32, #tpu.memory_space<vmem>>, %arg8: memref<1x32x32xbf16, #tpu.memory_space<vmem>>, %arg9: memref<1x32x32xbf16, #tpu.memory_space<vmem>>, %arg10: memref<1x32x32xbf16, #tpu.memory_space<vmem>>, %arg11: memref<1x32x32xbf16, #tpu.memory_space<vmem>>, %arg12: memref<1x1x32xf32, #tpu.memory_space<vmem>>, %arg13: memref<1x1x32xf32, #tpu.memory_space<vmem>>, %arg14: memref<1x1x32xf32, #tpu.memory_space<vmem>>, %arg15: memref<1x32x128xbf16, #tpu.memory_space<vmem>>, %arg16: memref<1x1x128xf32, #tpu.memory_space<vmem>>, %arg17: memref<1x128x32xbf16, #tpu.memory_space<vmem>>, %arg18: memref<1x1x32xf32, #tpu.memory_space<vmem>>, %arg19: memref<1x1x32xf32, #tpu.memory_space<vmem>>, %arg20: memref<1x1x32xf32, #tpu.memory_space<vmem>>, %arg21: memref<16x32xf32, #tpu.memory_space<vmem>>) attributes {dimension_semantics = [#tpu.dimension_semantics<arbitrary>], iteration_bounds = array<i64: 2>, scalar_prefetch = 0 : i64, scratch_operands = 0 : i64, tpu.core_type = #tpu.core_type<tc>, window_params = [{pipeline_mode = #tpu.pipeline_mode<synchronous>, transform_indices = @transform_0, window_bounds = array<i64: 16, 32>}, {pipeline_mode = #tpu.pipeline_mode<synchronous>, transform_indices = @transform_1, window_bounds = array<i64: 64, 64>}, {pipeline_mode = #tpu.pipeline_mode<synchronous>, transform_indices = @transform_2, window_bounds = array<i64: 64, 64>}, {transform_indices = @transform_3, window_bounds = array<i64: 1, 1, 32>}, {transform_indices = @transform_4, window_bounds = array<i64: 1, 1, 32>}, {transform_indices = @transform_5, window_bounds = array<i64: 1, 1, 32>}, {transform_indices = @transform_6, window_bounds = array<i64: 1, 1, 32>}, {transform_indices = @transform_7, window_bounds = array<i64: 1, 32, 32>}, {transform_indices = @transform_8, window_bounds = array<i64: 1, 32, 32>}, {transform_indices = @transform_9, window_bounds = array<i64: 1, 32, 32>}, {transform_indices = @transform_10, window_bounds = array<i64: 1, 32, 32>}, {transform_indices = @transform_11, window_bounds = array<i64: 1, 1, 32>}, {transform_indices = @transform_12, window_bounds = array<i64: 1, 1, 32>}, {transform_indices = @transform_13, window_bounds = array<i64: 1, 1, 32>}, {transform_indices = @transform_14, window_bounds = array<i64: 1, 32, 128>}, {transform_indices = @transform_15, window_bounds = array<i64: 1, 1, 128>}, {transform_indices = @transform_16, window_bounds = array<i64: 1, 128, 32>}, {transform_indices = @transform_17, window_bounds = array<i64: 1, 1, 32>}, {transform_indices = @transform_18, window_bounds = array<i64: 1, 1, 32>}, {transform_indices = @transform_19, window_bounds = array<i64: 1, 1, 32>}, {pipeline_mode = #tpu.pipeline_mode<synchronous>, transform_indices = @transform_20, window_bounds = array<i64: 16, 32>}]} {
    %c0_i32 = arith.constant 0 : i32
    %0 = arith.cmpi eq, %arg0, %c0_i32 : i32
    %1 = arith.extui %0 : i1 to i32
    %c0_i32_0 = arith.constant 0 : i32
    %2 = arith.cmpi ne, %1, %c0_i32_0 : i32
    scf.if %2 {
      %c0_98 = arith.constant 0 : index
      %c0_99 = arith.constant 0 : index
      %217 = vector.load %arg1[%c0_98, %c0_99] : memref<16x32xf32, #tpu.memory_space<vmem>>, vector<16x32xf32>
      %c0_100 = arith.constant 0 : index
      %c0_101 = arith.constant 0 : index
      %218 = vector.load %arg21[%c0_100, %c0_101] : memref<16x32xf32, #tpu.memory_space<vmem>>, vector<16x32xf32>
      tpu.vector_store %arg21[%c0_100, %c0_101], %217 {strides = array<i32>} : memref<16x32xf32, #tpu.memory_space<vmem>>, vector<16x32xf32>,
    } else {
    }
    %c0 = arith.constant 0 : index
    %c0_1 = arith.constant 0 : index
    %3 = vector.load %arg21[%c0, %c0_1] : memref<16x32xf32, #tpu.memory_space<vmem>>, vector<16x32xf32>
    %c0_2 = arith.constant 0 : index
    %c0_3 = arith.constant 0 : index
    %c0_4 = arith.constant 0 : index
    %4 = vector.load %arg4[%c0_2, %c0_3, %c0_4] : memref<1x1x32xf32, #tpu.memory_space<vmem>>, vector<1x1x32xf32>
    %5 = vector.shape_cast %4 : vector<1x1x32xf32> to vector<1x32xf32>
    %c0_5 = arith.constant 0 : index
    %c0_6 = arith.constant 0 : index
    %c0_7 = arith.constant 0 : index
    %6 = vector.load %arg5[%c0_5, %c0_6, %c0_7] : memref<1x1x32xf32, #tpu.memory_space<vmem>>, vector<1x1x32xf32>
    %7 = vector.shape_cast %6 : vector<1x1x32xf32> to vector<1x32xf32>
    %cst = arith.constant dense<0.000000e+00> : vector<16xf32>
    %8 = vector.multi_reduction <add>, %3, %cst [1] : vector<16x32xf32> to vector<16xf32>
    %9 = vector.shape_cast %8 : vector<16xf32> to vector<16x1xf32>
    %cst_8 = arith.constant 3.200000e+01 : f32
    %10 = vector.broadcast %cst_8 : f32 to vector<16x1xf32>
    %11 = arith.divf %9, %10 : vector<16x1xf32>
    %12 = vector.broadcast %11 : vector<16x1xf32> to vector<16x32xf32>
    %13 = arith.subf %3, %12 : vector<16x32xf32>
    %14 = arith.mulf %13, %13 : vector<16x32xf32>
    %cst_9 = arith.constant dense<0.000000e+00> : vector<16xf32>
    %15 = vector.multi_reduction <add>, %14, %cst_9 [1] : vector<16x32xf32> to vector<16xf32>
    %16 = vector.shape_cast %15 : vector<16xf32> to vector<16x1xf32>
    %cst_10 = arith.constant 3.200000e+01 : f32
    %17 = vector.broadcast %cst_10 : f32 to vector<16x1xf32>
    %18 = arith.divf %16, %17 : vector<16x1xf32>
    %19 = vector.broadcast %11 : vector<16x1xf32> to vector<16x32xf32>
    %20 = arith.subf %3, %19 : vector<16x32xf32>
    %cst_11 = arith.constant 9.99999974E-6 : f32
    %21 = vector.broadcast %cst_11 : f32 to vector<16x1xf32>
    %22 = arith.addf %18, %21 : vector<16x1xf32>
    %23 = math.rsqrt %22 : vector<16x1xf32>
    %24 = vector.broadcast %23 : vector<16x1xf32> to vector<16x32xf32>
    %25 = arith.mulf %20, %24 : vector<16x32xf32>
    %26 = vector.broadcast %5 : vector<1x32xf32> to vector<16x32xf32>
    %27 = arith.mulf %25, %26 : vector<16x32xf32>
    %28 = vector.broadcast %7 : vector<1x32xf32> to vector<16x32xf32>
    %29 = arith.addf %27, %28 : vector<16x32xf32>
    %c0_12 = arith.constant 0 : index
    %c0_13 = arith.constant 0 : index
    %c0_14 = arith.constant 0 : index
    %30 = vector.load %arg6[%c0_12, %c0_13, %c0_14] : memref<1x1x32xf32, #tpu.memory_space<vmem>>, vector<1x1x32xf32>
    %31 = vector.shape_cast %30 : vector<1x1x32xf32> to vector<1x32xf32>
    %c0_15 = arith.constant 0 : index
    %c0_16 = arith.constant 0 : index
    %c0_17 = arith.constant 0 : index
    %32 = vector.load %arg7[%c0_15, %c0_16, %c0_17] : memref<1x1x32xf32, #tpu.memory_space<vmem>>, vector<1x1x32xf32>
    %33 = vector.shape_cast %32 : vector<1x1x32xf32> to vector<1x32xf32>
    %cst_18 = arith.constant dense<0.000000e+00> : vector<16xf32>
    %34 = vector.multi_reduction <add>, %3, %cst_18 [1] : vector<16x32xf32> to vector<16xf32>
    %35 = vector.shape_cast %34 : vector<16xf32> to vector<16x1xf32>
    %cst_19 = arith.constant 3.200000e+01 : f32
    %36 = vector.broadcast %cst_19 : f32 to vector<16x1xf32>
    %37 = arith.divf %35, %36 : vector<16x1xf32>
    %38 = vector.broadcast %37 : vector<16x1xf32> to vector<16x32xf32>
    %39 = arith.subf %3, %38 : vector<16x32xf32>
    %40 = arith.mulf %39, %39 : vector<16x32xf32>
    %cst_20 = arith.constant dense<0.000000e+00> : vector<16xf32>
    %41 = vector.multi_reduction <add>, %40, %cst_20 [1] : vector<16x32xf32> to vector<16xf32>
    %42 = vector.shape_cast %41 : vector<16xf32> to vector<16x1xf32>
    %cst_21 = arith.constant 3.200000e+01 : f32
    %43 = vector.broadcast %cst_21 : f32 to vector<16x1xf32>
    %44 = arith.divf %42, %43 : vector<16x1xf32>
    %45 = vector.broadcast %37 : vector<16x1xf32> to vector<16x32xf32>
    %46 = arith.subf %3, %45 : vector<16x32xf32>
    %cst_22 = arith.constant 9.99999974E-6 : f32
    %47 = vector.broadcast %cst_22 : f32 to vector<16x1xf32>
    %48 = arith.addf %44, %47 : vector<16x1xf32>
    %49 = math.rsqrt %48 : vector<16x1xf32>
    %50 = vector.broadcast %49 : vector<16x1xf32> to vector<16x32xf32>
    %51 = arith.mulf %46, %50 : vector<16x32xf32>
    %52 = vector.broadcast %31 : vector<1x32xf32> to vector<16x32xf32>
    %53 = arith.mulf %51, %52 : vector<16x32xf32>
    %54 = vector.broadcast %33 : vector<1x32xf32> to vector<16x32xf32>
    %55 = arith.addf %53, %54 : vector<16x32xf32>
    %56 = arith.truncf %29 : vector<16x32xf32> to vector<16x32xbf16>
    %57 = arith.truncf %55 : vector<16x32xf32> to vector<16x32xbf16>
    %c0_23 = arith.constant 0 : index
    %c0_24 = arith.constant 0 : index
    %c0_25 = arith.constant 0 : index
    %58 = vector.load %arg8[%c0_23, %c0_24, %c0_25] : memref<1x32x32xbf16, #tpu.memory_space<vmem>>, vector<1x32x32xbf16>
    %59 = vector.shape_cast %58 : vector<1x32x32xbf16> to vector<32x32xbf16>
    %cst_26 = arith.constant dense<0.000000e+00> : vector<16x32xf32>
    %60 = tpu.matmul %56, %59, %cst_26 {dimension_numbers = #tpu.dot_dimension_numbers<[1], [0], [0], [1], [0, 0, 1, 1], [], []>} : vector<16x32xbf16>, vector<32x32xbf16>, vector<16x32xf32> -> vector<16x32xf32>
    %c0_27 = arith.constant 0 : index
    %c0_28 = arith.constant 0 : index
    %c0_29 = arith.constant 0 : index
    %61 = vector.load %arg9[%c0_27, %c0_28, %c0_29] : memref<1x32x32xbf16, #tpu.memory_space<vmem>>, vector<1x32x32xbf16>
    %62 = vector.shape_cast %61 : vector<1x32x32xbf16> to vector<32x32xbf16>
    %cst_30 = arith.constant dense<0.000000e+00> : vector<16x32xf32>
    %63 = tpu.matmul %56, %62, %cst_30 {dimension_numbers = #tpu.dot_dimension_numbers<[1], [0], [0], [1], [0, 0, 1, 1], [], []>} : vector<16x32xbf16>, vector<32x32xbf16>, vector<16x32xf32> -> vector<16x32xf32>
    %c0_31 = arith.constant 0 : index
    %c0_32 = arith.constant 0 : index
    %c0_33 = arith.constant 0 : index
    %64 = vector.load %arg10[%c0_31, %c0_32, %c0_33] : memref<1x32x32xbf16, #tpu.memory_space<vmem>>, vector<1x32x32xbf16>
    %65 = vector.shape_cast %64 : vector<1x32x32xbf16> to vector<32x32xbf16>
    %cst_34 = arith.constant dense<0.000000e+00> : vector<16x32xf32>
    %66 = tpu.matmul %57, %65, %cst_34 {dimension_numbers = #tpu.dot_dimension_numbers<[1], [0], [0], [1], [0, 0, 1, 1], [], []>} : vector<16x32xbf16>, vector<32x32xbf16>, vector<16x32xf32> -> vector<16x32xf32>
    %c0_35 = arith.constant 0 : index
    %c0_36 = arith.constant 0 : index
    %67 = vector.load %arg2[%c0_35, %c0_36] : memref<64x64xf32, #tpu.memory_space<vmem>>, vector<64x64xf32>
    %68 = vector.extract_strided_slice %60 {offsets = [0, 0], sizes = [16, 8], strides = [1, 1]} : vector<16x32xf32> to vector<16x8xf32>
    %69 = vector.extract_strided_slice %60 {offsets = [0, 8], sizes = [16, 8], strides = [1, 1]} : vector<16x32xf32> to vector<16x8xf32>
    %70 = vector.extract_strided_slice %60 {offsets = [0, 16], sizes = [16, 8], strides = [1, 1]} : vector<16x32xf32> to vector<16x8xf32>
    %71 = vector.extract_strided_slice %60 {offsets = [0, 24], sizes = [16, 8], strides = [1, 1]} : vector<16x32xf32> to vector<16x8xf32>
    %72 = tpu.concatenate %68, %69, %70, %71 in 0 : vector<16x8xf32>, vector<16x8xf32>, vector<16x8xf32>, vector<16x8xf32> -> vector<64x8xf32>
    %cst_37 = arith.constant dense<0.000000e+00> : vector<64x8xf32>
    %73 = tpu.matmul %67, %72, %cst_37 {dimension_numbers = #tpu.dot_dimension_numbers<[1], [0], [0], [1], [0, 0, 1, 1], [], []>} : vector<64x64xf32>, vector<64x8xf32>, vector<64x8xf32> -> vector<64x8xf32>
    %74 = arith.truncf %73 : vector<64x8xf32> to vector<64x8xbf16>
    %75 = vector.extract_strided_slice %63 {offsets = [0, 0], sizes = [16, 8], strides = [1, 1]} : vector<16x32xf32> to vector<16x8xf32>
    %76 = vector.extract_strided_slice %63 {offsets = [0, 8], sizes = [16, 8], strides = [1, 1]} : vector<16x32xf32> to vector<16x8xf32>
    %77 = vector.extract_strided_slice %63 {offsets = [0, 16], sizes = [16, 8], strides = [1, 1]} : vector<16x32xf32> to vector<16x8xf32>
    %78 = vector.extract_strided_slice %63 {offsets = [0, 24], sizes = [16, 8], strides = [1, 1]} : vector<16x32xf32> to vector<16x8xf32>
    %79 = tpu.concatenate %75, %76, %77, %78 in 0 : vector<16x8xf32>, vector<16x8xf32>, vector<16x8xf32>, vector<16x8xf32> -> vector<64x8xf32>
    %cst_38 = arith.constant dense<0.000000e+00> : vector<64x8xf32>
    %80 = tpu.matmul %67, %79, %cst_38 {dimension_numbers = #tpu.dot_dimension_numbers<[1], [0], [0], [1], [0, 0, 1, 1], [], []>} : vector<64x64xf32>, vector<64x8xf32>, vector<64x8xf32> -> vector<64x8xf32>
    %81 = arith.truncf %80 : vector<64x8xf32> to vector<64x8xbf16>
    %82 = vector.extract_strided_slice %66 {offsets = [0, 0], sizes = [16, 8], strides = [1, 1]} : vector<16x32xf32> to vector<16x8xf32>
    %83 = vector.extract_strided_slice %66 {offsets = [0, 8], sizes = [16, 8], strides = [1, 1]} : vector<16x32xf32> to vector<16x8xf32>
    %84 = vector.extract_strided_slice %66 {offsets = [0, 16], sizes = [16, 8], strides = [1, 1]} : vector<16x32xf32> to vector<16x8xf32>
    %85 = vector.extract_strided_slice %66 {offsets = [0, 24], sizes = [16, 8], strides = [1, 1]} : vector<16x32xf32> to vector<16x8xf32>
    %86 = tpu.concatenate %82, %83, %84, %85 in 0 : vector<16x8xf32>, vector<16x8xf32>, vector<16x8xf32>, vector<16x8xf32> -> vector<64x8xf32>
    %cst_39 = arith.constant dense<0.000000e+00> : vector<64x8xf32>
    %87 = tpu.matmul %67, %86, %cst_39 {dimension_numbers = #tpu.dot_dimension_numbers<[1], [0], [0], [1], [0, 0, 1, 1], [], []>} : vector<64x64xf32>, vector<64x8xf32>, vector<64x8xf32> -> vector<64x8xf32>
    %88 = arith.truncf %87 : vector<64x8xf32> to vector<64x8xbf16>
    %cst_40 = arith.constant dense<0.000000e+00> : vector<64x64xf32>
    %89 = tpu.matmul %74, %81, %cst_40 {dimension_numbers = #tpu.dot_dimension_numbers<[1], [1], [0], [0], [0, 0, 1, 0], [], []>} : vector<64x8xbf16>, vector<64x8xbf16>, vector<64x64xf32> -> vector<64x64xf32>
    %cst_41 = arith.constant 0.353553385 : f32
    %90 = vector.broadcast %cst_41 : f32 to vector<64x64xf32>
    %91 = arith.mulf %89, %90 : vector<64x64xf32>
    %c0_42 = arith.constant 0 : index
    %c0_43 = arith.constant 0 : index
    %92 = vector.load %arg3[%c0_42, %c0_43] : memref<64x64xf32, #tpu.memory_space<vmem>>, vector<64x64xf32>
    %93 = arith.addf %91, %92 : vector<64x64xf32>
    %cst_44 = arith.constant dense<0xFF800000> : vector<64xf32>
    %94 = vector.multi_reduction <maximumf>, %93, %cst_44 [1] : vector<64x64xf32> to vector<64xf32>
    %95 = vector.shape_cast %94 : vector<64xf32> to vector<64x1xf32>
    %96 = vector.broadcast %95 : vector<64x1xf32> to vector<64x64xf32>
    %97 = arith.subf %93, %96 : vector<64x64xf32>
    %98 = math.exp %97 : vector<64x64xf32>
    %cst_45 = arith.constant dense<0.000000e+00> : vector<64xf32>
    %99 = vector.multi_reduction <add>, %98, %cst_45 [1] : vector<64x64xf32> to vector<64xf32>
    %100 = vector.shape_cast %99 : vector<64xf32> to vector<64x1xf32>
    %101 = arith.truncf %98 : vector<64x64xf32> to vector<64x64xbf16>
    %cst_46 = arith.constant dense<0.000000e+00> : vector<64x8xf32>
    %102 = tpu.matmul %101, %88, %cst_46 {dimension_numbers = #tpu.dot_dimension_numbers<[1], [0], [0], [1], [0, 0, 1, 1], [], []>} : vector<64x64xbf16>, vector<64x8xbf16>, vector<64x8xf32> -> vector<64x8xf32>
    %103 = vector.broadcast %100 : vector<64x1xf32> to vector<64x8xf32>
    %104 = arith.divf %102, %103 : vector<64x8xf32>
    %c0_47 = arith.constant 0 : index
    %c0_48 = arith.constant 0 : index
    %c0_49 = arith.constant 0 : index
    %105 = vector.load %arg11[%c0_47, %c0_48, %c0_49] : memref<1x32x32xbf16, #tpu.memory_space<vmem>>, vector<1x32x32xbf16>
    %106 = vector.shape_cast %105 : vector<1x32x32xbf16> to vector<32x32xbf16>
    %107 = vector.extract_strided_slice %104 {offsets = [0, 0], sizes = [8, 8], strides = [1, 1]} : vector<64x8xf32> to vector<8x8xf32>
    %108 = vector.extract_strided_slice %104 {offsets = [32, 0], sizes = [8, 8], strides = [1, 1]} : vector<64x8xf32> to vector<8x8xf32>
    %109 = tpu.concatenate %107, %108 in 0 : vector<8x8xf32>, vector<8x8xf32> -> vector<16x8xf32>
    %110 = arith.truncf %109 : vector<16x8xf32> to vector<16x8xbf16>
    %111 = vector.extract_strided_slice %106 {offsets = [0, 0], sizes = [8, 32], strides = [1, 1]} : vector<32x32xbf16> to vector<8x32xbf16>
    %cst_50 = arith.constant dense<0.000000e+00> : vector<16x32xf32>
    %112 = tpu.matmul %110, %111, %cst_50 {dimension_numbers = #tpu.dot_dimension_numbers<[1], [0], [0], [1], [0, 0, 1, 1], [], []>} : vector<16x8xbf16>, vector<8x32xbf16>, vector<16x32xf32> -> vector<16x32xf32>
    %113 = vector.extract_strided_slice %104 {offsets = [8, 0], sizes = [8, 8], strides = [1, 1]} : vector<64x8xf32> to vector<8x8xf32>
    %114 = vector.extract_strided_slice %104 {offsets = [40, 0], sizes = [8, 8], strides = [1, 1]} : vector<64x8xf32> to vector<8x8xf32>
    %115 = tpu.concatenate %113, %114 in 0 : vector<8x8xf32>, vector<8x8xf32> -> vector<16x8xf32>
    %116 = arith.truncf %115 : vector<16x8xf32> to vector<16x8xbf16>
    %117 = vector.extract_strided_slice %106 {offsets = [8, 0], sizes = [8, 32], strides = [1, 1]} : vector<32x32xbf16> to vector<8x32xbf16>
    %cst_51 = arith.constant dense<0.000000e+00> : vector<16x32xf32>
    %118 = tpu.matmul %116, %117, %cst_51 {dimension_numbers = #tpu.dot_dimension_numbers<[1], [0], [0], [1], [0, 0, 1, 1], [], []>} : vector<16x8xbf16>, vector<8x32xbf16>, vector<16x32xf32> -> vector<16x32xf32>
    %119 = arith.addf %112, %118 : vector<16x32xf32>
    %120 = vector.extract_strided_slice %104 {offsets = [16, 0], sizes = [8, 8], strides = [1, 1]} : vector<64x8xf32> to vector<8x8xf32>
    %121 = vector.extract_strided_slice %104 {offsets = [48, 0], sizes = [8, 8], strides = [1, 1]} : vector<64x8xf32> to vector<8x8xf32>
    %122 = tpu.concatenate %120, %121 in 0 : vector<8x8xf32>, vector<8x8xf32> -> vector<16x8xf32>
    %123 = arith.truncf %122 : vector<16x8xf32> to vector<16x8xbf16>
    %124 = vector.extract_strided_slice %106 {offsets = [16, 0], sizes = [8, 32], strides = [1, 1]} : vector<32x32xbf16> to vector<8x32xbf16>
    %cst_52 = arith.constant dense<0.000000e+00> : vector<16x32xf32>
    %125 = tpu.matmul %123, %124, %cst_52 {dimension_numbers = #tpu.dot_dimension_numbers<[1], [0], [0], [1], [0, 0, 1, 1], [], []>} : vector<16x8xbf16>, vector<8x32xbf16>, vector<16x32xf32> -> vector<16x32xf32>
    %126 = arith.addf %119, %125 : vector<16x32xf32>
    %127 = vector.extract_strided_slice %104 {offsets = [24, 0], sizes = [8, 8], strides = [1, 1]} : vector<64x8xf32> to vector<8x8xf32>
    %128 = vector.extract_strided_slice %104 {offsets = [56, 0], sizes = [8, 8], strides = [1, 1]} : vector<64x8xf32> to vector<8x8xf32>
    %129 = tpu.concatenate %127, %128 in 0 : vector<8x8xf32>, vector<8x8xf32> -> vector<16x8xf32>
    %130 = arith.truncf %129 : vector<16x8xf32> to vector<16x8xbf16>
    %131 = vector.extract_strided_slice %106 {offsets = [24, 0], sizes = [8, 32], strides = [1, 1]} : vector<32x32xbf16> to vector<8x32xbf16>
    %cst_53 = arith.constant dense<0.000000e+00> : vector<16x32xf32>
    %132 = tpu.matmul %130, %131, %cst_53 {dimension_numbers = #tpu.dot_dimension_numbers<[1], [0], [0], [1], [0, 0, 1, 1], [], []>} : vector<16x8xbf16>, vector<8x32xbf16>, vector<16x32xf32> -> vector<16x32xf32>
    %133 = arith.addf %126, %132 : vector<16x32xf32>
    %134 = arith.addf %3, %133 : vector<16x32xf32>
    %c0_54 = arith.constant 0 : index
    %c0_55 = arith.constant 0 : index
    %c0_56 = arith.constant 0 : index
    %135 = vector.load %arg12[%c0_54, %c0_55, %c0_56] : memref<1x1x32xf32, #tpu.memory_space<vmem>>, vector<1x1x32xf32>
    %136 = vector.shape_cast %135 : vector<1x1x32xf32> to vector<1x32xf32>
    %137 = vector.broadcast %136 : vector<1x32xf32> to vector<16x32xf32>
    %138 = arith.addf %134, %137 : vector<16x32xf32>
    %c0_57 = arith.constant 0 : index
    %c0_58 = arith.constant 0 : index
    %c0_59 = arith.constant 0 : index
    %139 = vector.load %arg13[%c0_57, %c0_58, %c0_59] : memref<1x1x32xf32, #tpu.memory_space<vmem>>, vector<1x1x32xf32>
    %140 = vector.shape_cast %139 : vector<1x1x32xf32> to vector<1x32xf32>
    %c0_60 = arith.constant 0 : index
    %c0_61 = arith.constant 0 : index
    %c0_62 = arith.constant 0 : index
    %141 = vector.load %arg14[%c0_60, %c0_61, %c0_62] : memref<1x1x32xf32, #tpu.memory_space<vmem>>, vector<1x1x32xf32>
    %142 = vector.shape_cast %141 : vector<1x1x32xf32> to vector<1x32xf32>
    %cst_63 = arith.constant dense<0.000000e+00> : vector<16xf32>
    %143 = vector.multi_reduction <add>, %138, %cst_63 [1] : vector<16x32xf32> to vector<16xf32>
    %144 = vector.shape_cast %143 : vector<16xf32> to vector<16x1xf32>
    %cst_64 = arith.constant 3.200000e+01 : f32
    %145 = vector.broadcast %cst_64 : f32 to vector<16x1xf32>
    %146 = arith.divf %144, %145 : vector<16x1xf32>
    %147 = vector.broadcast %146 : vector<16x1xf32> to vector<16x32xf32>
    %148 = arith.subf %138, %147 : vector<16x32xf32>
    %149 = arith.mulf %148, %148 : vector<16x32xf32>
    %cst_65 = arith.constant dense<0.000000e+00> : vector<16xf32>
    %150 = vector.multi_reduction <add>, %149, %cst_65 [1] : vector<16x32xf32> to vector<16xf32>
    %151 = vector.shape_cast %150 : vector<16xf32> to vector<16x1xf32>
    %cst_66 = arith.constant 3.200000e+01 : f32
    %152 = vector.broadcast %cst_66 : f32 to vector<16x1xf32>
    %153 = arith.divf %151, %152 : vector<16x1xf32>
    %154 = vector.broadcast %146 : vector<16x1xf32> to vector<16x32xf32>
    %155 = arith.subf %138, %154 : vector<16x32xf32>
    %cst_67 = arith.constant 9.99999974E-6 : f32
    %156 = vector.broadcast %cst_67 : f32 to vector<16x1xf32>
    %157 = arith.addf %153, %156 : vector<16x1xf32>
    %158 = math.rsqrt %157 : vector<16x1xf32>
    %159 = vector.broadcast %158 : vector<16x1xf32> to vector<16x32xf32>
    %160 = arith.mulf %155, %159 : vector<16x32xf32>
    %161 = vector.broadcast %140 : vector<1x32xf32> to vector<16x32xf32>
    %162 = arith.mulf %160, %161 : vector<16x32xf32>
    %163 = vector.broadcast %142 : vector<1x32xf32> to vector<16x32xf32>
    %164 = arith.addf %162, %163 : vector<16x32xf32>
    %165 = arith.truncf %164 : vector<16x32xf32> to vector<16x32xbf16>
    %c0_68 = arith.constant 0 : index
    %c0_69 = arith.constant 0 : index
    %c0_70 = arith.constant 0 : index
    %166 = vector.load %arg15[%c0_68, %c0_69, %c0_70] : memref<1x32x128xbf16, #tpu.memory_space<vmem>>, vector<1x32x128xbf16>
    %167 = vector.shape_cast %166 : vector<1x32x128xbf16> to vector<32x128xbf16>
    %cst_71 = arith.constant dense<0.000000e+00> : vector<16x128xf32>
    %168 = tpu.matmul %165, %167, %cst_71 {dimension_numbers = #tpu.dot_dimension_numbers<[1], [0], [0], [1], [0, 0, 1, 1], [], []>} : vector<16x32xbf16>, vector<32x128xbf16>, vector<16x128xf32> -> vector<16x128xf32>
    %c0_72 = arith.constant 0 : index
    %c0_73 = arith.constant 0 : index
    %c0_74 = arith.constant 0 : index
    %169 = vector.load %arg16[%c0_72, %c0_73, %c0_74] : memref<1x1x128xf32, #tpu.memory_space<vmem>>, vector<1x1x128xf32>
    %170 = vector.shape_cast %169 : vector<1x1x128xf32> to vector<1x128xf32>
    %171 = vector.broadcast %170 : vector<1x128xf32> to vector<16x128xf32>
    %172 = arith.addf %168, %171 : vector<16x128xf32>
    %cst_75 = arith.constant 5.000000e-01 : f32
    %173 = vector.broadcast %cst_75 : f32 to vector<16x128xf32>
    %174 = arith.mulf %173, %172 : vector<16x128xf32>
    %cst_76 = arith.constant 0.707106769 : f32
    %175 = vector.broadcast %cst_76 : f32 to vector<16x128xf32>
    %176 = arith.mulf %172, %175 : vector<16x128xf32>
    %177 = math.erf %176 : vector<16x128xf32>
    %cst_77 = arith.constant 1.000000e+00 : f32
    %178 = vector.broadcast %cst_77 : f32 to vector<16x128xf32>
    %179 = arith.addf %178, %177 : vector<16x128xf32>
    %180 = arith.mulf %174, %179 : vector<16x128xf32>
    %181 = arith.truncf %180 : vector<16x128xf32> to vector<16x128xbf16>
    %c0_78 = arith.constant 0 : index
    %c0_79 = arith.constant 0 : index
    %c0_80 = arith.constant 0 : index
    %182 = vector.load %arg17[%c0_78, %c0_79, %c0_80] : memref<1x128x32xbf16, #tpu.memory_space<vmem>>, vector<1x128x32xbf16>
    %183 = vector.shape_cast %182 : vector<1x128x32xbf16> to vector<128x32xbf16>
    %cst_81 = arith.constant dense<0.000000e+00> : vector<16x32xf32>
    %184 = tpu.matmul %181, %183, %cst_81 {dimension_numbers = #tpu.dot_dimension_numbers<[1], [0], [0], [1], [0, 0, 1, 1], [], []>} : vector<16x128xbf16>, vector<128x32xbf16>, vector<16x32xf32> -> vector<16x32xf32>
    %c0_82 = arith.constant 0 : index
    %c0_83 = arith.constant 0 : index
    %c0_84 = arith.constant 0 : index
    %185 = vector.load %arg18[%c0_82, %c0_83, %c0_84] : memref<1x1x32xf32, #tpu.memory_space<vmem>>, vector<1x1x32xf32>
    %186 = vector.shape_cast %185 : vector<1x1x32xf32> to vector<1x32xf32>
    %187 = vector.broadcast %186 : vector<1x32xf32> to vector<16x32xf32>
    %188 = arith.addf %184, %187 : vector<16x32xf32>
    %189 = arith.addf %138, %188 : vector<16x32xf32>
    %c0_85 = arith.constant 0 : index
    %c0_86 = arith.constant 0 : index
    %c0_87 = arith.constant 0 : index
    %190 = vector.load %arg19[%c0_85, %c0_86, %c0_87] : memref<1x1x32xf32, #tpu.memory_space<vmem>>, vector<1x1x32xf32>
    %191 = vector.shape_cast %190 : vector<1x1x32xf32> to vector<1x32xf32>
    %c0_88 = arith.constant 0 : index
    %c0_89 = arith.constant 0 : index
    %c0_90 = arith.constant 0 : index
    %192 = vector.load %arg20[%c0_88, %c0_89, %c0_90] : memref<1x1x32xf32, #tpu.memory_space<vmem>>, vector<1x1x32xf32>
    %193 = vector.shape_cast %192 : vector<1x1x32xf32> to vector<1x32xf32>
    %cst_91 = arith.constant dense<0.000000e+00> : vector<16xf32>
    %194 = vector.multi_reduction <add>, %189, %cst_91 [1] : vector<16x32xf32> to vector<16xf32>
    %195 = vector.shape_cast %194 : vector<16xf32> to vector<16x1xf32>
    %cst_92 = arith.constant 3.200000e+01 : f32
    %196 = vector.broadcast %cst_92 : f32 to vector<16x1xf32>
    %197 = arith.divf %195, %196 : vector<16x1xf32>
    %198 = vector.broadcast %197 : vector<16x1xf32> to vector<16x32xf32>
    %199 = arith.subf %189, %198 : vector<16x32xf32>
    %200 = arith.mulf %199, %199 : vector<16x32xf32>
    %cst_93 = arith.constant dense<0.000000e+00> : vector<16xf32>
    %201 = vector.multi_reduction <add>, %200, %cst_93 [1] : vector<16x32xf32> to vector<16xf32>
    %202 = vector.shape_cast %201 : vector<16xf32> to vector<16x1xf32>
    %cst_94 = arith.constant 3.200000e+01 : f32
    %203 = vector.broadcast %cst_94 : f32 to vector<16x1xf32>
    %204 = arith.divf %202, %203 : vector<16x1xf32>
    %205 = vector.broadcast %197 : vector<16x1xf32> to vector<16x32xf32>
    %206 = arith.subf %189, %205 : vector<16x32xf32>
    %cst_95 = arith.constant 9.99999974E-6 : f32
    %207 = vector.broadcast %cst_95 : f32 to vector<16x1xf32>
    %208 = arith.addf %204, %207 : vector<16x1xf32>
    %209 = math.rsqrt %208 : vector<16x1xf32>
    %210 = vector.broadcast %209 : vector<16x1xf32> to vector<16x32xf32>
    %211 = arith.mulf %206, %210 : vector<16x32xf32>
    %212 = vector.broadcast %191 : vector<1x32xf32> to vector<16x32xf32>
    %213 = arith.mulf %211, %212 : vector<16x32xf32>
    %214 = vector.broadcast %193 : vector<1x32xf32> to vector<16x32xf32>
    %215 = arith.addf %213, %214 : vector<16x32xf32>
    %c0_96 = arith.constant 0 : index
    %c0_97 = arith.constant 0 : index
    %216 = vector.load %arg21[%c0_96, %c0_97] : memref<16x32xf32, #tpu.memory_space<vmem>>, vector<16x32xf32>
    tpu.vector_store %arg21[%c0_96, %c0_97], %215 {strides = array<i32>} : memref<16x32xf32, #tpu.memory_space<vmem>>, vector<16x32xf32>,
    return
  }
  func.func @transform_0(%arg0: i32) -> (i32, i32) {
    %c0_i32 = arith.constant 0 : i32
    %c0_i32_0 = arith.constant 0 : i32
    %c0_i32_1 = arith.constant 0 : i32
    return %c0_i32, %c0_i32_0 : i32, i32
  }
  func.func @transform_1(%arg0: i32) -> (i32, i32) {
    %c0_i32 = arith.constant 0 : i32
    %c0_i32_0 = arith.constant 0 : i32
    %c0_i32_1 = arith.constant 0 : i32
    return %c0_i32, %c0_i32_0 : i32, i32
  }
  func.func @transform_2(%arg0: i32) -> (i32, i32) {
    %c0_i32 = arith.constant 0 : i32
    %c0_i32_0 = arith.constant 0 : i32
    %c0_i32_1 = arith.constant 0 : i32
    return %c0_i32, %c0_i32_0 : i32, i32
  }
  func.func @transform_3(%arg0: i32) -> (i32, i32, i32) {
    %c0_i32 = arith.constant 0 : i32
    %c0_i32_0 = arith.constant 0 : i32
    %c0_i32_1 = arith.constant 0 : i32
    return %arg0, %c0_i32, %c0_i32_0 : i32, i32, i32
  }
  func.func @transform_4(%arg0: i32) -> (i32, i32, i32) {
    %c0_i32 = arith.constant 0 : i32
    %c0_i32_0 = arith.constant 0 : i32
    %c0_i32_1 = arith.constant 0 : i32
    return %arg0, %c0_i32, %c0_i32_0 : i32, i32, i32
  }
  func.func @transform_5(%arg0: i32) -> (i32, i32, i32) {
    %c0_i32 = arith.constant 0 : i32
    %c0_i32_0 = arith.constant 0 : i32
    %c0_i32_1 = arith.constant 0 : i32
    return %arg0, %c0_i32, %c0_i32_0 : i32, i32, i32
  }
  func.func @transform_6(%arg0: i32) -> (i32, i32, i32) {
    %c0_i32 = arith.constant 0 : i32
    %c0_i32_0 = arith.constant 0 : i32
    %c0_i32_1 = arith.constant 0 : i32
    return %arg0, %c0_i32, %c0_i32_0 : i32, i32, i32
  }
  func.func @transform_7(%arg0: i32) -> (i32, i32, i32) {
    %c0_i32 = arith.constant 0 : i32
    %c0_i32_0 = arith.constant 0 : i32
    %c0_i32_1 = arith.constant 0 : i32
    return %arg0, %c0_i32, %c0_i32_0 : i32, i32, i32
  }
  func.func @transform_8(%arg0: i32) -> (i32, i32, i32) {
    %c0_i32 = arith.constant 0 : i32
    %c0_i32_0 = arith.constant 0 : i32
    %c0_i32_1 = arith.constant 0 : i32
    return %arg0, %c0_i32, %c0_i32_0 : i32, i32, i32
  }
  func.func @transform_9(%arg0: i32) -> (i32, i32, i32) {
    %c0_i32 = arith.constant 0 : i32
    %c0_i32_0 = arith.constant 0 : i32
    %c0_i32_1 = arith.constant 0 : i32
    return %arg0, %c0_i32, %c0_i32_0 : i32, i32, i32
  }
  func.func @transform_10(%arg0: i32) -> (i32, i32, i32) {
    %c0_i32 = arith.constant 0 : i32
    %c0_i32_0 = arith.constant 0 : i32
    %c0_i32_1 = arith.constant 0 : i32
    return %arg0, %c0_i32, %c0_i32_0 : i32, i32, i32
  }
  func.func @transform_11(%arg0: i32) -> (i32, i32, i32) {
    %c0_i32 = arith.constant 0 : i32
    %c0_i32_0 = arith.constant 0 : i32
    %c0_i32_1 = arith.constant 0 : i32
    return %arg0, %c0_i32, %c0_i32_0 : i32, i32, i32
  }
  func.func @transform_12(%arg0: i32) -> (i32, i32, i32) {
    %c0_i32 = arith.constant 0 : i32
    %c0_i32_0 = arith.constant 0 : i32
    %c0_i32_1 = arith.constant 0 : i32
    return %arg0, %c0_i32, %c0_i32_0 : i32, i32, i32
  }
  func.func @transform_13(%arg0: i32) -> (i32, i32, i32) {
    %c0_i32 = arith.constant 0 : i32
    %c0_i32_0 = arith.constant 0 : i32
    %c0_i32_1 = arith.constant 0 : i32
    return %arg0, %c0_i32, %c0_i32_0 : i32, i32, i32
  }
  func.func @transform_14(%arg0: i32) -> (i32, i32, i32) {
    %c0_i32 = arith.constant 0 : i32
    %c0_i32_0 = arith.constant 0 : i32
    %c0_i32_1 = arith.constant 0 : i32
    return %arg0, %c0_i32, %c0_i32_0 : i32, i32, i32
  }
  func.func @transform_15(%arg0: i32) -> (i32, i32, i32) {
    %c0_i32 = arith.constant 0 : i32
    %c0_i32_0 = arith.constant 0 : i32
    %c0_i32_1 = arith.constant 0 : i32
    return %arg0, %c0_i32, %c0_i32_0 : i32, i32, i32
  }
  func.func @transform_16(%arg0: i32) -> (i32, i32, i32) {
    %c0_i32 = arith.constant 0 : i32
    %c0_i32_0 = arith.constant 0 : i32
    %c0_i32_1 = arith.constant 0 : i32
    return %arg0, %c0_i32, %c0_i32_0 : i32, i32, i32
  }
  func.func @transform_17(%arg0: i32) -> (i32, i32, i32) {
    %c0_i32 = arith.constant 0 : i32
    %c0_i32_0 = arith.constant 0 : i32
    %c0_i32_1 = arith.constant 0 : i32
    return %arg0, %c0_i32, %c0_i32_0 : i32, i32, i32
  }
  func.func @transform_18(%arg0: i32) -> (i32, i32, i32) {
    %c0_i32 = arith.constant 0 : i32
    %c0_i32_0 = arith.constant 0 : i32
    %c0_i32_1 = arith.constant 0 : i32
    return %arg0, %c0_i32, %c0_i32_0 : i32, i32, i32
  }
  func.func @transform_19(%arg0: i32) -> (i32, i32, i32) {
    %c0_i32 = arith.constant 0 : i32
    %c0_i32_0 = arith.constant 0 : i32
    %c0_i32_1 = arith.constant 0 : i32
    return %arg0, %c0_i32, %c0_i32_0 : i32, i32, i32
  }
  func.func @transform_20(%arg0: i32) -> (i32, i32) {
    %c0_i32 = arith.constant 0 : i32
    %c0_i32_0 = arith.constant 0 : i32
    %c0_i32_1 = arith.constant 0 : i32
    return %c0_i32, %c0_i32_0 : i32, i32
  }
}

</mosaic_0001>

<bundles_post_ra>
// kernel: tpu_custom_call.1
= control target key start
LH: loop header
LB: loop body
LE: loop exit
PB: predicated region body
PF: predicated region fallthrough
CT: control target
= control target key end

     0   :  { %s4182_s0 = inlined_call_operand.hbm [shape: f32[16,32], index: 0, kind: input, shape index: {}]   ;;  %s4183_s1 = inlined_call_operand.vmem [shape: f32[64,64], index: 1, kind: input, shape index: {}]   ;;  %s4184_s2 = inlined_call_operand.vmem [shape: f32[64,64], index: 2, kind: input, shape index: {}]   ;;  %s4185_s3 = inlined_call_operand.vmem [shape: f32[2,1,32], index: 3, kind: input, shape index: {}]   ;;  %s4186_s4 = inlined_call_operand.vmem [shape: f32[2,1,32], index: 4, kind: input, shape index: {}]   ;;  %s4187_s5 = inlined_call_operand.vmem [shape: f32[2,1,32], index: 5, kind: input, shape index: {}]   ;;  %s4188_s6 = inlined_call_operand.vmem [shape: f32[2,1,32], index: 6, kind: input, shape index: {}]   ;;  %s4189_s7 = inlined_call_operand.vmem [shape: bf16[2,32,32], index: 7, kind: input, shape index: {}]   ;;  %s4190_s8 = inlined_call_operand.hbm [shape: bf16[2,32,32], index: 8, kind: input, shape index: {}]   ;;  %s4191_s9 = inlined_call_operand.hbm [shape: bf16[2,32,32], index: 9, kind: input, shape index: {}]   ;;  %s4192_s10 = inlined_call_operand.hbm [shape: bf16[2,32,32], index: 10, kind: input, shape index: {}]   ;;  %s4193_s11 = inlined_call_operand.vmem [shape: f32[2,1,32], index: 11, kind: input, shape index: {}]   ;;  %s4194_s12 = inlined_call_operand.vmem [shape: f32[2,1,32], index: 12, kind: input, shape index: {}]   ;;  %s4195_s13 = inlined_call_operand.vmem [shape: f32[2,1,32], index: 13, kind: input, shape index: {}]   ;;  %s4196_s14 = inlined_call_operand.hbm [shape: bf16[2,32,128], index: 14, kind: input, shape index: {}]   ;;  %s4197_s15 = inlined_call_operand.vmem [shape: f32[2,1,128], index: 15, kind: input, shape index: {}]   ;;  %s4198_s16 = inlined_call_operand.vmem [shape: bf16[2,128,32], index: 16, kind: input, shape index: {}]   ;;  %s4199_s17 = inlined_call_operand.vmem [shape: f32[2,1,32], index: 17, kind: input, shape index: {}]   ;;  %s4200_s18 = inlined_call_operand.vmem [shape: f32[2,1,32], index: 18, kind: input, shape index: {}]   ;;  %s4201_s19 = inlined_call_operand.vmem [shape: f32[2,1,32], index: 19, kind: input, shape index: {}]   ;;  %s4202_s20 = inlined_call_operand.hbm [shape: f32[16,32], index: 20, kind: output, shape index: {}]  }
   0x1   :  { %4216 = sst [smem:[#allocation19_spill]] %s4182_s0 }
   0x2   :  { %4217 = sst [smem:[#allocation20_spill]] %s4183_s1 }
   0x3   :  { %4218 = sst [smem:[#allocation21_spill]] %s4184_s2 }
   0x4   :  { %4219 = sst [smem:[#allocation22_spill]] %s4185_s3 }
   0x5   :  { %4220 = sst [smem:[#allocation23_spill]] %s4186_s4 }
   0x6   :  { %4221 = sst [smem:[#allocation24_spill]] %s4189_s7 }
   0x7   :  { %4222 = sst [smem:[#allocation25_spill]] %s4190_s8 }
   0x8   :  { %4223 = sst [smem:[#allocation26_spill]] %s4191_s9 }
   0x9   :  { %4224 = sst [smem:[#allocation27_spill]] %s4192_s10 }
   0xa   :  { %4225 = sst [smem:[#allocation28_spill]] %s4194_s12 }
   0xb   :  { %4226 = sst [smem:[#allocation29_spill]] %s4195_s13 }
   0xc   :  { %4227 = sst [smem:[#allocation30_spill]] %s4197_s15 }
   0xd   :  { %4228 = sst [smem:[#allocation31_spill]] %s4198_s16 }
   0xe   :  { %4229 = sst [smem:[#allocation32_spill]] %s4199_s17 }
   0xf   :  { %4230 = sst [smem:[#allocation33_spill]] %s4200_s18 }
  0x10   :  { %4231 = sst [smem:[#allocation34_spill]] %s4201_s19 }
  0x11   :  { %4232 = sst [smem:[#allocation35_spill]] %s4202_s20 }
  0x12   :  { %25 = vsyncpa [#allocation3], 0 }
  0x13   :  { %26 = vsyncpa [#allocation6], 0 }
  0x14   :  { %28 = vsyncpa [#allocation6 + $0x1], 0 }
  0x15   :  { %29 = vsyncpa [#allocation9], 0 }
  0x16   :  { %31 = vsyncpa [#allocation9 + $0x1], 0 }
  0x17   :  { %32 = vsyncpa [#allocation4], 0  ;;  %s3541_s1 = smov 0   ;;  %s3543_s22 = smov 0  }
  0x18   :  { %s3545_s23 = smov 0   ;;  %s3547_s24 = smov 0  }
  0x19 LB: > { %4233 = sst [smem:[#allocation16_spill]] %s3413_s23  ;;  %s3562_s2 = sadd.s32 1, %s3417_s24   ;;  %s3417_s24 = sphi %s3547_s24, %s4285_s24   ;;  %s3413_s23 = sphi %s3545_s23, %s4287_s23   ;;  %s3409_s22 = sphi %s3543_s22, %s4289_s22   ;;  %s3405_s1 = sphi %s3541_s1, %s4288_s1  }
  0x1a   : > { %4234 = sst [smem:[#allocation17_spill]] %s3562_s2  ;;  %s238_s25 = sadd.s32 1, %s3413_s23 }
  0x1b   : > { %s235_s3 = ssub.s32 %s3417_s24, %s3562_s2  ;;  %p245_p0 = scmp.ne.s32.totalorder %s3413_s23, %s3409_s22 }
  0x1c   : > { %p236_p1 = scmp.eq.s32.totalorder %s235_s3, 0  ;;  %p246_p2 = scmp.eq.s32.totalorder %s3417_s24, 0 }
  0x1d   : > { %p3096_p3 = scmp.lt.s32.totalorder %s3417_s24, 2  ;;  %s4208_s27 = sand.u32 1, %s3417_s24  }
  0x1e   : > { %s3572_s26 = scalar_select %p236_p1, %s3413_s23, %s238_s25  }
  0x1f   : > { %p247_p4 = por %p246_p2, %p245_p0  ;;  %s635_s28 = sand.u32 1, %s3413_s23  }
  0x20   : > { %4235 = sst [smem:[#allocation18_spill]] %s3572_s26  ;;  %s3576_s4 = sshll.u32 %s635_s28, 4 }
  0x21   : > { %s3579_s29 = sshll.u32 %s3417_s24, 8  ;;  %s4236_s8 = sld [smem:[#allocation25_spill]] }
  0x22   : > { %s637_s3 = scalar_lea.vmem [#allocation5], %s3576_s4  ;;  %p3588_p5 = pnand %p3096_p3, %p247_p4 }
  0x23   : > { %s644_s25 = sshll.u32 %s637_s3, 4  ;;  %s3596_s28 = scalar_lea.sflag [#allocation6], %s4208_s27  ;;  %s3592_s25 = int_to_ptr.vmem [resolvable:$true] %s644_s25 }
  0x24   : > { %p3602_p7 = pneg %p3588_p5 }
  0x27   : > { %s3585_s21 = scalar_lea.hbm %s4236_s8, %s3579_s29  ;;  %s3214_s2 = scalar_lea.hbm %s4236_s8, 512 }
  0x28   : > { %s3209_s23 = scalar_lea.hbm %s3585_s21, 256  ;;  %p3215_p10 = scmp.lt.s32.totalorder %s3585_s21, %s4236_s8 }
  0x29   : > { %p3210_p6 = scmp.ne.s32.totalorder %s3585_s21, %s3209_s23  ;;  %p3216_p11 = scmp.lt.s32.totalorder %s3214_s2, %s3209_s23 }
  0x2b   : > { %p3212_p8 = pnand %p3602_p7, %p3210_p6  ;;  %p3217_p12 = por %p3216_p11, %p3215_p10 }
  0x2d   : > { %p3213_p9 = pneg %p3212_p8 }
  0x2f   : > { %p3218_p13 = pnand %p3217_p12, %p3213_p9 }
  0x31   : > { %3221 = shalt.err (!%p3218_p13)
}
  0x32   : > { %s3222_s27 = scalar_lea.vmem %s3592_s25, 256  ;;  %s3419_s18 = smov [#allocation5]  }
  0x33   : > { %p3223_p0 = scmp.ne.s32.totalorder %s3592_s25, %s3222_s27  ;;  %s3227_s0 = sshll.u32 %s3419_s18, 4  ;;  %s3228_s0 = int_to_ptr.vmem [resolvable:$false] %s3227_s0 }
  0x34   : > { %s3229_s3 = scalar_lea.vmem %s3228_s0, 512  ;;  %p3230_p3 = scmp.lt.s32.totalorder %s3592_s25, %s3228_s0 }
  0x35   : > { %p3225_p1 = pnand %p3223_p0, %p3602_p7  ;;  %p3231_p4 = scmp.lt.s32.totalorder %s3229_s3, %s3222_s27 }
  0x37   : > { %p3226_p2 = pneg %p3225_p1  ;;  %p3232_p6 = por %p3231_p4, %p3230_p3 }
  0x39   : > { %p3233_p8 = pnand %p3232_p6, %p3226_p2 }
  0x3b   : > { %3236 = shalt.err (!%p3233_p8)
}
  0x3c   : > { %s4209_s19 = smov 64   ;;  %s4211_s20 = smov 4  }
  0x3d   : > { %3085 = dma.hbm_to_vmem [thread:$0]  (!%p3588_p5), %s3585_s21, 256, %s3592_s25, %s3596_s28, %s4209_s19, %s4209_s19, %s4211_s20  }
  0x3e   : > { %s4239_s10 = sld [smem:[#allocation27_spill]]  ;;  %s679_s27 = scalar_lea.vmem [#allocation8], %s3576_s4 }
  0x3f   : > { %s686_s0 = sshll.u32 %s679_s27, 4  ;;  %s4240_s3 = sand.u32 1, %s3417_s24   ;;  %s3635_s0 = int_to_ptr.vmem [resolvable:$true] %s686_s0 }
  0x40   : > { %s3639_s8 = scalar_lea.sflag [#allocation9], %s4240_s3 }
  0x44   : > { %s3632_s2 = scalar_lea.hbm %s4239_s10, %s3579_s29  ;;  %s3242_s18 = scalar_lea.hbm %s4239_s10, 512 }
  0x45   : > { %s3237_s16 = scalar_lea.hbm %s3632_s2, 256  ;;  %p3243_p12 = scmp.lt.s32.totalorder %s3632_s2, %s4239_s10 }
  0x46   : > { %p3238_p9 = scmp.ne.s32.totalorder %s3632_s2, %s3237_s16  ;;  %p3244_p13 = scmp.lt.s32.totalorder %s3242_s18, %s3237_s16 }
  0x48   : > { %p3240_p10 = pnand %p3238_p9, %p3602_p7  ;;  %p3245_p0 = por %p3244_p13, %p3243_p12 }
  0x4a   : > { %p3241_p11 = pneg %p3240_p10 }
  0x4c   : > { %p3246_p1 = pnand %p3245_p0, %p3241_p11 }
  0x4e   : > { %3249 = shalt.err (!%p3246_p1)
}
  0x4f   : > { %s3250_s27 = scalar_lea.vmem %s3635_s0, 256  ;;  %s3422_s3 = smov [#allocation8]  }
  0x50   : > { %p3251_p2 = scmp.ne.s32.totalorder %s3635_s0, %s3250_s27  ;;  %s3255_s21 = sshll.u32 %s3422_s3, 4  ;;  %s3256_s21 = int_to_ptr.vmem [resolvable:$false] %s3255_s21 }
  0x51   : > { %s3257_s25 = scalar_lea.vmem %s3256_s21, 512  ;;  %p3258_p6 = scmp.lt.s32.totalorder %s3635_s0, %s3256_s21 }
  0x52   : > { %p3253_p3 = pnand %p3251_p2, %p3602_p7  ;;  %p3259_p8 = scmp.lt.s32.totalorder %s3257_s25, %s3250_s27 }
  0x54   : > { %p3254_p4 = pneg %p3253_p3  ;;  %p3260_p9 = por %p3259_p8, %p3258_p6 }
  0x56   : > { %p3261_p10 = pnand %p3260_p9, %p3254_p4 }
  0x58   : > { %3264 = shalt.err (!%p3261_p10)
}
  0x59   : > { %s4241_s16 = smov 64   ;;  %s3666_s19 = sadd.s32 4294967295, %s3417_s24  }
  0x5a   : > { %3091 = dma.hbm_to_vmem [thread:$0]  (!%p3588_p5), %s3632_s2, 256, %s3635_s0, %s3639_s8, %s4241_s16, %s4241_s16, %s4211_s20  }
  0x5b   : > { %p251_p11 = scmp.ne.s32.totalorder %s3409_s22, %s3405_s1  ;;  %p4213_p12 = scmp.eq.s32.totalorder %s3666_s19, 0 }
  0x5c   : > { %p2670_p13 = scmp.ge.s32.totalorder %s3417_s24, 1  ;;  %p569_p0 = scmp.lt.s32.totalorder %s3417_s24, 3 }
  0x5d   : > { %p3675_p1 = por %p4213_p12, %p251_p11  ;;  %s3423_s2 = smov [#allocation2]  }
  0x5e   : > { %p3680_p3 = pnand %p2670_p13, %p569_p0  ;;  %s581_s0 = sshll.u32 %s3423_s2, 4  ;;  %s582_s0 = int_to_ptr.vmem [resolvable:$true] %s581_s0 }
  0x5f   : > { %s4242_s18 = scalar_select %p3675_p1, 1, 0 }
  0x60   : > { %s4243_s23 = scalar_select %p3680_p3, 1, 0 }
  0x61   : > { %p3078_p4 = pneg %p3680_p3  ;;  %s4245_s9 = sld [smem:[#allocation26_spill]] }
  0x62   : > { %s658_s21 = scalar_lea.vmem [#allocation7], %s3576_s4  ;;  %s3276_s2 = scalar_lea.vmem %s582_s0, 256 }
  0x63   : > { %p3688_p6 = pnand %p3078_p4, %p4213_p12  ;;  %s665_s25 = sshll.u32 %s658_s21, 4  ;;  %s3699_s25 = int_to_ptr.vmem [resolvable:$true] %s665_s25 }
  0x64   : > { %p3277_p9 = scmp.ne.s32.totalorder %s582_s0, %s3276_s2  ;;  %p3284_p13 = scmp.lt.s32.totalorder %s582_s0, %s582_s0 }
  0x65   : > { %p3267_p8 = pneg %p3688_p6  ;;  %p3285_p0 = scmp.lt.s32.totalorder %s3276_s2, %s3276_s2 }
  0x67   : > { %s3696_s3 = scalar_lea.hbm %s4245_s9, %s3579_s29  ;;  %p3279_p10 = pnand %p3277_p9, %p3267_p8 }
  0x68   : > { %p3286_p4 = por %p3285_p0, %p3284_p13 }
  0x69   : > { %p3280_p11 = pneg %p3279_p10 }
  0x6b   : > { %p3287_p2 = pnand %p3286_p4, %p3280_p11 }
  0x6d   : > { %3290 = shalt.err (!%p3287_p2)
}
  0x6e   : > { %s3424_s20 = smov 128   ;;  %s3425_s24 = smov 8  }
  0x6f   : > { %s4246_s10 = sld [smem:[#allocation19_spill]]  ;;  %s3291_s17 = scalar_lea.hbm %s3696_s3, 256 }
  0x70   : > { %p3292_p8 = scmp.ne.s32.totalorder %s3696_s3, %s3291_s17  ;;  %s3296_s13 = scalar_lea.hbm %s4245_s9, 512 }
  0x71   : > { %p3297_p2 = scmp.lt.s32.totalorder %s3696_s3, %s4245_s9  ;;  %p3298_p11 = scmp.lt.s32.totalorder %s3296_s13, %s3291_s17 }
  0x72   : > { %p3294_p9 = pnand %p3292_p8, %p3602_p7 }
  0x73   : > { %p3299_p13 = por %p3298_p11, %p3297_p2 }
  0x74   : > { %p3295_p10 = pneg %p3294_p9 }
  0x75   : > { %3081 = dma.hbm_to_vmem [thread:$0]  (!%p3688_p6), %s4246_s10, 256, %s582_s0, [#allocation3], %s3424_s20, %s3424_s20, %s3425_s24  }
  0x76   : > { %p3300_p0 = pnand %p3299_p13, %p3295_p10 }
  0x78   : > { %3303 = shalt.err (!%p3300_p0)
}
  0x79   : > { %s3304_s10 = scalar_lea.vmem %s3699_s25, 256  ;;  %s3426_s20 = smov [#allocation7]  }
  0x7a   : > { %p3305_p6 = scmp.ne.s32.totalorder %s3699_s25, %s3304_s10  ;;  %s3309_s15 = sshll.u32 %s3426_s20, 4  ;;  %s3310_s15 = int_to_ptr.vmem [resolvable:$false] %s3309_s15 }
  0x7b   : > { %s3311_s0 = scalar_lea.vmem %s3310_s15, 512  ;;  %p3312_p9 = scmp.lt.s32.totalorder %s3699_s25, %s3310_s15 }
  0x7c   : > { %p3307_p4 = pnand %p3305_p6, %p3602_p7  ;;  %p3313_p12 = scmp.lt.s32.totalorder %s3311_s0, %s3304_s10 }
  0x7e   : > { %p3308_p8 = pneg %p3307_p4  ;;  %p3314_p1 = por %p3313_p12, %p3312_p9 }
  0x80   : > { %p3315_p3 = pnand %p3314_p1, %p3308_p8 }
  0x82   : > { %3318 = shalt.err (!%p3315_p3)
}
  0x83   : > { %s4247_s7 = smov 4   ;;  %s3736_s17 = scalar_lea.hbm %s4196_s14, %s3579_s29 }
  0x84   : > { %3088 = dma.hbm_to_vmem [thread:$0]  (!%p3588_p5), %s3696_s3, 256, %s3699_s25, %s3596_s28, %s4241_s16, %s4241_s16, %s4247_s7  }
  0x85   : > { %s718_s1 = scalar_lea.vmem [#allocation10], %s3576_s4  ;;  %s3319_s27 = scalar_lea.hbm %s3736_s17, 256 }
  0x86   : > { %s725_s24 = sshll.u32 %s718_s1, 4  ;;  %p3320_p12 = scmp.ne.s32.totalorder %s3736_s17, %s3319_s27  ;;  %s726_s24 = int_to_ptr.vmem [resolvable:$true] %s725_s24 }
  0x87   : > { %s3324_s28 = scalar_lea.hbm %s4196_s14, 512  ;;  %p3325_p10 = scmp.lt.s32.totalorder %s3736_s17, %s4196_s14 }
  0x88   : > { %p3322_p1 = pnand %p3320_p12, %p3602_p7  ;;  %p3326_p2 = scmp.lt.s32.totalorder %s3324_s28, %s3319_s27 }
  0x8a   : > { %p3323_p3 = pneg %p3322_p1  ;;  %p3327_p11 = por %p3326_p2, %p3325_p10 }
  0x8c   : > { %p3328_p13 = pnand %p3327_p11, %p3323_p3 }
  0x8e   : > { %3331 = shalt.err (!%p3328_p13)
}
  0x8f   : > { %s3332_s4 = scalar_lea.vmem %s726_s24, 256  ;;  %s3427_s29 = smov [#allocation10]  }
  0x90   : > { %p3333_p0 = scmp.ne.s32.totalorder %s726_s24, %s3332_s4  ;;  %s3337_s10 = sshll.u32 %s3427_s29, 4  ;;  %s3338_s10 = int_to_ptr.vmem [resolvable:$false] %s3337_s10 }
  0x91   : > { %s3339_s20 = scalar_lea.vmem %s3338_s10, 512  ;;  %p3340_p8 = scmp.lt.s32.totalorder %s726_s24, %s3338_s10 }
  0x92   : > { %p3335_p6 = pnand %p3333_p0, %p3602_p7  ;;  %p3341_p9 = scmp.lt.s32.totalorder %s3339_s20, %s3332_s4 }
  0x94   : > { %p3336_p4 = pneg %p3335_p6  ;;  %p3342_p12 = por %p3341_p9, %p3340_p8 }
  0x96   : > { %p3343_p1 = pnand %p3342_p12, %p3336_p4 }
  0x98   : > { %3346 = shalt.err (!%p3343_p1)
}
  0x99   : > { %3094 = dma.hbm_to_vmem [thread:$0]  (!%p3588_p5), %s3736_s17, 256, %s726_s24, %s3639_s8, %s4241_s16, %s4241_s16, %s4247_s7  }
  0x9a   : > { %p4248_p7 = scmp.ne.s32.totalorder %s4243_s23, 0 }
  0x9b   : > { %p4249_p3 = scmp.eq.s32.totalorder (!%p4248_p7), %s3666_s19, 0 }
  0x9c   : > { %769 = sbr.rel (%p4248_p7) target bundleno = 2934 (0xb76), region = 100 }
  0xa1   : > { %3388 = dma.done.wait (%p4249_p3), [#allocation3], 256   ;;  %p4250_p10 = pmov %p4249_p3 }
  0xa2   : > { %s775_s30 = sand.u32 1, %s3666_s19   ;;  %s777_s26 = sand.u32 1, %s3409_s22  }
  0xa3   : > { %3390 = vsyncadd (%p4250_p10), [#allocation3], 4294967040  ;;  %s3767_s15 = sshll.u32 %s777_s26, 4  ;;  %s776_s0 = scalar_lea.sflag [#allocation6], %s775_s30 }
  0xa4   : > { %p4251_p5 = scmp.ne.s32.totalorder %s4242_s18, 0 }
  0xa6   : > { %3392 = dma.done.wait (%p4251_p5), %s776_s0, 512  }
  0xa7   : > { %3394 = vsyncadd (%p4251_p5), %s776_s0, 4294966784  ;;  %s794_s16 = scalar_lea.sflag [#allocation9], %s775_s30  ;;  %s3776_s23 = scalar_lea.vmem [#allocation8], %s3767_s15 }
  0xa8   : > { %3396 = dma.done.wait (%p4251_p5), %s794_s16, 512  }
  0xa9   : > { %3398 = vsyncadd (%p4251_p5), %s794_s16, 4294966784  ;;  %p916_p2 = scmp.lt.s32.totalorder %s3666_s19, 1  ;;  %s4254_s17 = sld [smem:[#allocation24_spill]] }
  0xaa   : > { %s4257_s10 = sld [smem:[#allocation30_spill]]  ;;  %s806_s4 = scalar_lea.vmem [#allocation10], %s3767_s15 }
  0xab   : > { %s3784_s7 = scalar_select %p916_p2, %s3666_s19, 1 }
  0xac   : > { %s4258_s0 = sld [smem:[#allocation32_spill]]  ;;  %p4262_p11 = scmp.ne.s32.totalorder %s3666_s19, 0 }
  0xad   : > { %s2771_s20 = sshll.u32 %s3784_s7, 4  ;;  %s2772_s12 = sshll.u32 %s3784_s7, 6 }
  0xae   : > { %s4259_s13 = sld [smem:[#allocation31_spill]] }
  0xaf   : > { %s3810_s1 = scalar_lea.vmem %s4254_s17, %s2771_s20  ;;  %s4260_s21 = sld [smem:[#allocation33_spill]] }
  0xb0   : > { %s944_s18 = scalar_lea.vmem %s4257_s10, %s3784_s7  ;;  %s4261_s3 = sld [smem:[#allocation34_spill]] }
  0xb2   : > { %s952_s9 = scalar_lea.vmem %s4258_s0, %s3784_s7  ;;  %963 = sbr.rel (%p4262_p11) target bundleno = 185 (0xb9), region = 124 }
  0xb4   : > { %s3832_s17 = scalar_lea.vmem %s4259_s13, %s2772_s12 }
  0xb5   : > { %s955_s8 = scalar_lea.vmem %s4260_s21, %s3784_s7 }
  0xb6   : > { %s958_s2 = scalar_lea.vmem %s4261_s3, %s3784_s7 }
  0xb7   : > { %v964_v0 = vld [vmem:[#allocation2] sm:$0xff]  ;;  %vm966_vm0 = vcmask 261120   ;;  %v965_v1 = vld [vmem:[#allocation2 + $0x8] sm:$0xff] }
  0xb8   : > { %967 = vst.msk [vmem:[#allocation11] sm:$0xff] %vm966_vm0, %v964_v0  ;;  %968 = vst.msk [vmem:[#allocation11 + $0x8] sm:$0xff] %vm966_vm0, %v965_v1 }
  0xb9 PF: > { %vm973_vm1 = vcmask 261120   ;;  %v3145_v16 = vld [vmem:[%s3810_s1 + $0x8] sm:$0xff]   ;;  %s4263_s12 = scalar_lea.vmem [#allocation5], %s3767_s15  ;;  %v3428_v18 = vmov 0.0   ;;  %v3147_v19 = vld [vmem:[%s3810_s1] sm:$0xff]   ;;  %vm3429_vm2 = vmmov 0   ;;  %s4269_s21 = scalar_lea.vmem %s4187_s5, %s3784_s7 }
  0xba   : > { %v3146_v17 = vld [vmem:[%s4263_s12 + $0x8] sm:$0xff]   ;;  %2866 = vmatprep.subr.bf16.mxu0 %v3428_v18  ;;  %2874 = vmatprep.subr.bf16.mxu1 %v3428_v18  ;;  %s4264_s10 = smov %s4263_s12  ;;  %s4265_s29 = sld [smem:[#allocation22_spill]]  ;;  %v2698_v37 = vld [vmem:[%s4269_s21] ss:$0 sm:$0xff]  ;;  %vm1242_vm3 = vcmask 523264   ;;  %vm1634_vm4 = vcmask 64512  }
  0xbb   : > { %2867 = vmatpush3.bf16.msra.mxu0 %v3145_v16  ;;  %2875 = vmatpush3.bf16.msra.mxu1 %v3146_v17  ;;  %v3148_v20 = vld [vmem:[%s4264_s10] sm:$0xff]   ;;  %s4267_s20 = sld [smem:[#allocation23_spill]]  ;;  %s4270_s28 = scalar_lea.vmem [#allocation7], %s3767_s15  ;;  %vm1926_vm5 = vcmask 1043456  }
  0xbc   : > { %2868 = vmatprep.subr.bf16.mxu0 %v3428_v18  ;;  %2876 = vmatprep.subr.bf16.mxu1 %v3428_v18  ;;  %v3149_v38 = vld [vmem:[%s4270_s28 + $0x8] sm:$0xff]   ;;  %s4271_s25 = smov %s4270_s28  ;;  %s4272_s10 = scalar_lea.vmem %s4188_s6, %s3784_s7 }
  0xbd   : > { %2870 = vmatprep.mubr.msk.bf16.mxu0 %vm3429_vm2, %v3428_v18  ;;  %2878 = vmatprep.mubr.msk.bf16.mxu1 %vm3429_vm2, %v3428_v18  ;;  %v3150_v42 = vld [vmem:[%s4271_s25] sm:$0xff]   ;;  %s3430_s0 = smov 104   ;;  %s3431_s1 = smov 112  }
  0xbe   : > { %v2699_v43 = vld [vmem:[%s4272_s10] ss:$0 sm:$0xff]  ;;  %s4273_s26 = sld [smem:[#allocation20_spill]]  ;;  %s3432_s16 = smov 120  }
  0xbf   : > { %v3845_v2 = vld [vmem:[#allocation11] sm:$0xff]  ;;  %v3847_v3 = vld [vmem:[#allocation11 + $0x8] sm:$0xff]  ;;  %2869 = vmatpush3.bf16.msra.mxu0 %v3147_v19  ;;  %2877 = vmatpush3.bf16.msra.mxu1 %v3148_v20  ;;  %s4275_s27 = scalar_lea.vmem %s4193_s11, %s3784_s7  ;;  %s4276_s21 = sld [smem:[#allocation28_spill]] }
  0xc0   : > { %v974_v4 = vsel %vm973_vm1, %v3845_v2, 0.0  ;;  %v977_v5 = vsel %vm973_vm1, %v3847_v3, 0.0  ;;  %2882 = vmatprep.subr.bf16.mxu0 %v3428_v18  ;;  %s4266_s30 = scalar_lea.vmem %s4265_s29, %s3784_s7  ;;  %s4278_s12 = sld [smem:[#allocation29_spill]] }
  0xc1   : > { %975 = vadd.xlane.f32.xlu0 %v974_v4  ;;  %v2696_v29 = vld [vmem:[%s4266_s30] ss:$0 sm:$0xff]  ;;  %s4268_s13 = scalar_lea.vmem %s4267_s20, %s3784_s7  ;;  %s3433_s15 = smov [#allocation11]  }
  0xc2   : > { %v2697_v33 = vld [vmem:[%s4268_s13] ss:$0 sm:$0xff]  ;;  %s4274_s13 = sld [smem:[#allocation21_spill]]  ;;  %p3098_p13 = scmp.eq.s32.totalorder %s3666_s19, 1 }
  0xc4   : > { %v3909_v55 = vld [vmem:[%s4273_s26] sm:$0xff]  ;;  %v1221_v16 = vld [vmem:[%s4273_s26 + $0x38] sm:$0xff] }
  0xc5   : > { %978 = vadd.xlane.f32.xlu0 %v977_v5  ;;  %s4277_s28 = scalar_lea.vmem %s4276_s21, %s3784_s7 }
  0xc6   : > { %s4279_s10 = scalar_lea.vmem %s4278_s12, %s3784_s7 }
 0x14a   : > { %v976_v6 = vpop.xlane.xlu0 %975 }
 0x14b   : > { %v981_v7 = vmul.f32 0.03125, %v976_v6  ;;  %v3932_v6 = vld [vmem:[%s4273_s26 + $0x8] sm:$0xff] }
 0x14d   : > { %v983_v8 = vsub.f32 %v3845_v2, %v981_v7  ;;  %v3937_v7 = vld [vmem:[%s4273_s26 + $0x10] sm:$0xff] }
 0x14e   : > { %v979_v9 = vpop.xlane.xlu0 %978 }
 0x14f   : > { %v982_v10 = vmul.f32 0.03125, %v979_v9  ;;  %v985_v11 = vmul.f32 %v983_v8, %v983_v8 }
 0x151   : > { %v984_v12 = vsub.f32 %v3847_v3, %v982_v10  ;;  %v987_v13 = vsel %vm973_vm1, %v985_v11, 0.0  ;;  %v1217_v10 = vld [vmem:[%s4273_s26 + $0x18] sm:$0xff]  ;;  %v1218_v11 = vld [vmem:[%s4273_s26 + $0x20] sm:$0xff] }
 0x152   : > { %988 = vadd.xlane.f32.xlu1 %v987_v13  ;;  %v1219_v13 = vld [vmem:[%s4273_s26 + $0x28] sm:$0xff] }
 0x153   : > { %v986_v14 = vmul.f32 %v984_v12, %v984_v12 }
 0x155   : > { %v990_v15 = vsel %vm973_vm1, %v986_v14, 0.0  ;;  %v1220_v14 = vld [vmem:[%s4273_s26 + $0x30] sm:$0xff] }
 0x156   : > { %991 = vadd.xlane.f32.xlu1 %v990_v15 }
 0x1db   : > { %v989_v21 = vpop.xlane.xlu1 %988 }
 0x1dc   : > { %v993_v22 = vmul.f32 0.03125, %v989_v21 }
 0x1de   : > { %v995_v23 = vadd.f32 1e-05, %v993_v22 }
 0x1df   : > { %v992_v24 = vpop.xlane.xlu1 %991 }
 0x1e0   : > { %3161 = vrsqrt.f32 %v995_v23  ;;  %v994_v25 = vmul.f32 0.03125, %v992_v24 }
 0x1e2   : > { %v996_v26 = vadd.f32 1e-05, %v994_v25 }
 0x1e4   : > { %3163 = vrsqrt.f32 %v996_v26 }
 0x1ed   : > { %v3162_v27 = vpop.eup %3161 }
 0x1ee   : > { %v999_v28 = vmul.f32 %v3162_v27, %v983_v8 }
 0x1f0   : > { %v1007_v32 = vmul.f32 %v2696_v29, %v999_v28  ;;  %v1025_v41 = vmul.f32 %v2698_v37, %v999_v28 }
 0x1f1   : > { %v3164_v30 = vpop.eup %3163 }
 0x1f2   : > { %v1000_v31 = vmul.f32 %v3164_v30, %v984_v12  ;;  %v1015_v35 = vadd.f32 %v2697_v33, %v1007_v32  ;;  %v1033_v45 = vadd.f32 %v2699_v43, %v1025_v41 }
 0x1f4   : > { %v1008_v34 = vmul.f32 %v2696_v29, %v1000_v31  ;;  %v1026_v39 = vmul.f32 %v2698_v37, %v1000_v31 }
 0x1f6   : > { %v1016_v36 = vadd.f32 %v2697_v33, %v1008_v34  ;;  %v1034_v44 = vadd.f32 %v2699_v43, %v1026_v39 }
 0x1f8   : > { %v1035_v40 = vpack.c.bf16 %v1016_v36, %v1015_v35  ;;  %v1036_v46 = vpack.c.bf16 %v1034_v44, %v1033_v45 }
 0x1fa   : > { %2871 = vmatmul.mubr.msk.bf16.vlgmr.msra.gmra.mxu0 %vm973_vm1, %v1035_v40  ;;  %2879 = vmatmul.mubr.msk.bf16.vlgmr.msra.gmra.mxu1 %vm973_vm1, %v1035_v40 }
 0x1fb   : > { %2883 = vmatpush3.bf16.msra.mxu0 %v3149_v38  ;;  %2886 = vmatprep.mubr.msk.bf16.mxu0 %vm3429_vm2, %v3428_v18 }
 0x1fc   : > { %2884 = vmatprep.subr.bf16.mxu0 %v3428_v18  ;;  %2906 = vmatprep.mubr.msk.f32.mxu1 %vm1242_vm3, %v3909_v55 }
 0x1ff   : > { %2885 = vmatpush3.bf16.msra.mxu0 %v3150_v42 }
 0x202   : > { %2887 = vmatmul.mubr.msk.bf16.vlgmr.msra.gmra.mxu0 %vm973_vm1, %v1036_v46 }
 0x2ba   : > { %v1090_v47 = vpop.f32.mrf.mxu0  ;;  %v3902_v48 = vpop.f32.mrf.mxu1 }
 0x2bb   : > { %1236 = vrot.lane.b32.xlu1 %v1090_v47, %s3430_s0 }
 0x2bc   : > { %v2872_v49 = vpop.f32.mrf.mxu0  ;;  %v2880_v50 = vpop.f32.mrf.mxu1 }
 0x2be   : > { %v1093_v51 = vpop.f32.mrf.mxu0  ;;  %v3904_v52 = vpop.f32.mrf.mxu1 }
 0x2bf   : > { %1232 = vrot.lane.b32.xlu1 %v1093_v51, %s3431_s1  ;;  %1238 = vrot.lane.b32.xlu0 %v1093_v51, %s3430_s0 }
 0x2c0   : > { %v2873_v53 = vpop.f32.mrf.mxu0  ;;  %v2881_v54 = vpop.f32.mrf.mxu1 }
 0x2c2   : > { %v3913_v56 = vpop.f32.mrf.mxu0 }
 0x2c3   : > { %1230 = vrot.lane.b32.xlu1 %v1090_v47, %s3431_s1  ;;  %1226 = vrot.lane.b32.xlu0 %v1093_v51, %s3432_s16 }
 0x2c4   : > { %v2888_v57 = vpop.f32.mrf.mxu0 }
 0x2c6   : > { %v3915_v58 = vpop.f32.mrf.mxu0 }
 0x2c7   : > { %1224 = vrot.lane.b32.xlu1 %v1090_v47, %s3432_s16  ;;  %1392 = vrot.lane.b32.xlu0 %v3904_v52, %s3430_s0 }
 0x2c8   : > { %v2889_v59 = vpop.f32.mrf.mxu0 }
 0x2cb   : > { %1390 = vrot.lane.b32.xlu1 %v3902_v48, %s3430_s0  ;;  %1386 = vrot.lane.b32.xlu0 %v3904_v52, %s3431_s1 }
 0x2cf   : > { %1384 = vrot.lane.b32.xlu1 %v3902_v48, %s3431_s1  ;;  %1380 = vrot.lane.b32.xlu0 %v3904_v52, %s3432_s16 }
 0x2d3   : > { %1378 = vrot.lane.b32.xlu1 %v3902_v48, %s3432_s16  ;;  %1521 = vrot.lane.b32.xlu0 %v3915_v58, %s3430_s0 }
 0x2d7   : > { %1519 = vrot.lane.b32.xlu1 %v3913_v56, %s3430_s0  ;;  %1515 = vrot.lane.b32.xlu0 %v3915_v58, %s3431_s1 }
 0x2db   : > { %1513 = vrot.lane.b32.xlu1 %v3913_v56, %s3431_s1  ;;  %1509 = vrot.lane.b32.xlu0 %v3915_v58, %s3432_s16 }
 0x2df   : > { %1507 = vrot.lane.b32.xlu1 %v3913_v56, %s3432_s16 }
 0x32d   : > { %v1237_v60 = vpop.permute.xlu1 %1236 }
 0x331   : > { %v1233_v61 = vpop.permute.xlu1 %1232  ;;  %v1239_v62 = vpop.permute.xlu0 %1238 }
 0x332   : > { %2890 = vmatprep.subr.mxu1 %v1239_v62 }
 0x333   : > { %2891 = vmatpush3.msra.mxu1 %v1239_v62 }
 0x334   : > { %2892 = vmatprep.subr.mxu1 %v1237_v60 }
 0x335   : > { %v1231_v63 = vpop.permute.xlu1 %1230  ;;  %2893 = vmatpush3.msra.mxu1 %v1237_v60  ;;  %v1227_v0 = vpop.permute.xlu0 %1226 }
 0x336   : > { %2894 = vmatprep.subr.mxu1 %v1233_v61 }
 0x337   : > { %2895 = vmatpush3.msra.mxu1 %v1233_v61 }
 0x338   : > { %2896 = vmatprep.subr.mxu1 %v1231_v63 }
 0x339   : > { %v1225_v1 = vpop.permute.xlu1 %1224  ;;  %2897 = vmatpush3.msra.mxu1 %v1231_v63  ;;  %v1393_v4 = vpop.permute.xlu0 %1392 }
 0x33a   : > { %2898 = vmatprep.subr.mxu1 %v1227_v0 }
 0x33b   : > { %2899 = vmatpush3.msra.mxu1 %v1227_v0 }
 0x33c   : > { %2900 = vmatprep.subr.mxu1 %v1225_v1 }
 0x33d   : > { %v1391_v5 = vpop.permute.xlu1 %1390  ;;  %2901 = vmatpush3.msra.mxu1 %v1225_v1  ;;  %v1387_v8 = vpop.permute.xlu0 %1386 }
 0x33e   : > { %2902 = vmatprep.subr.mxu1 %v1093_v51 }
 0x33f   : > { %2903 = vmatpush3.msra.mxu1 %v1093_v51 }
 0x340   : > { %2904 = vmatprep.subr.mxu1 %v1090_v47 }
 0x341   : > { %2905 = vmatpush3.msra.mxu1 %v1090_v47  ;;  %v1385_v9 = vpop.permute.xlu1 %1384  ;;  %v1381_v12 = vpop.permute.xlu0 %1380 }
 0x342   : > { %2907 = vmatmul.mubr.msk.f32.vlgmr.msra.gmra.mxu1 %vm1242_vm3, %v3932_v6  ;;  %2918 = vmatprep.subr.mxu1 %v1393_v4 }
 0x343   : > { %2919 = vmatpush3.msra.mxu1 %v1393_v4  ;;  %2909 = vmatprep.mubr.msk.f32.mxu1 %vm1242_vm3, %v3937_v7  ;;  %v1732_v4 = vld [vmem:[%s4274_s13] sm:$0xff] }
 0x344   : > { %2920 = vmatprep.subr.mxu1 %v1391_v5 }
 0x345   : > { %2921 = vmatpush3.msra.mxu1 %v1391_v5  ;;  %v1379_v15 = vpop.permute.xlu1 %1378  ;;  %v1522_v17 = vpop.permute.xlu0 %1521 }
 0x346   : > { %2910 = vmatmul.mubr.msk.f32.gmra.mxu1 %vm1242_vm3, %v1217_v10  ;;  %2922 = vmatprep.subr.mxu1 %v1387_v8 }
 0x347   : > { %2923 = vmatpush3.msra.mxu1 %v1387_v8  ;;  %2912 = vmatprep.mubr.msk.f32.mxu1 %vm1242_vm3, %v1218_v11  ;;  %v1734_v8 = vld [vmem:[%s4274_s13 + $0x10] sm:$0xff] }
 0x348   : > { %2924 = vmatprep.subr.mxu1 %v1385_v9 }
 0x349   : > { %2925 = vmatpush3.msra.mxu1 %v1385_v9  ;;  %v1520_v19 = vpop.permute.xlu1 %1519  ;;  %v1516_v20 = vpop.permute.xlu0 %1515 }
 0x34a   : > { %2913 = vmatmul.mubr.msk.f32.gmra.mxu1 %vm1242_vm3, %v1219_v13  ;;  %2926 = vmatprep.subr.mxu1 %v1381_v12 }
 0x34b   : > { %2927 = vmatpush3.msra.mxu1 %v1381_v12  ;;  %2915 = vmatprep.mubr.msk.f32.mxu1 %vm1242_vm3, %v1220_v14 }
 0x34c   : > { %2928 = vmatprep.subr.mxu1 %v1379_v15 }
 0x34d   : > { %2929 = vmatpush3.msra.mxu1 %v1379_v15  ;;  %v1514_v21 = vpop.permute.xlu1 %1513  ;;  %v1510_v22 = vpop.permute.xlu0 %1509 }
 0x34e   : > { %2916 = vmatmul.mubr.msk.f32.gmra.mxu1 %vm1242_vm3, %v1221_v16  ;;  %2930 = vmatprep.subr.mxu1 %v3904_v52 }
 0x34f   : > { %2931 = vmatpush3.msra.mxu1 %v3904_v52  ;;  %2934 = vmatprep.mubr.msk.f32.mxu1 %vm1242_vm3, %v3909_v55 }
 0x350   : > { %2932 = vmatprep.subr.mxu1 %v3902_v48 }
 0x351   : > { %2933 = vmatpush3.msra.mxu1 %v3902_v48  ;;  %v1508_v23 = vpop.permute.xlu1 %1507 }
 0x352   : > { %2935 = vmatmul.mubr.msk.f32.vlgmr.msra.gmra.mxu1 %vm1242_vm3, %v3932_v6  ;;  %2946 = vmatprep.subr.mxu1 %v1522_v17 }
 0x353   : > { %2947 = vmatpush3.msra.mxu1 %v1522_v17  ;;  %2937 = vmatprep.mubr.msk.f32.mxu1 %vm1242_vm3, %v3937_v7  ;;  %v1735_v17 = vld [vmem:[%s4274_s13 + $0x18] sm:$0xff] }
 0x354   : > { %2948 = vmatprep.subr.mxu1 %v1520_v19 }
 0x355   : > { %2949 = vmatpush3.msra.mxu1 %v1520_v19 }
 0x356   : > { %2938 = vmatmul.mubr.msk.f32.gmra.mxu1 %vm1242_vm3, %v1217_v10  ;;  %2950 = vmatprep.subr.mxu1 %v1516_v20 }
 0x357   : > { %2951 = vmatpush3.msra.mxu1 %v1516_v20  ;;  %2940 = vmatprep.mubr.msk.f32.mxu1 %vm1242_vm3, %v1218_v11 }
 0x358   : > { %2952 = vmatprep.subr.mxu1 %v1514_v21 }
 0x359   : > { %2953 = vmatpush3.msra.mxu1 %v1514_v21 }
 0x35a   : > { %2941 = vmatmul.mubr.msk.f32.gmra.mxu1 %vm1242_vm3, %v1219_v13  ;;  %2954 = vmatprep.subr.mxu1 %v1510_v22 }
 0x35b   : > { %2955 = vmatpush3.msra.mxu1 %v1510_v22  ;;  %2943 = vmatprep.mubr.msk.f32.mxu1 %vm1242_vm3, %v1220_v14 }
 0x35c   : > { %2956 = vmatprep.subr.mxu1 %v1508_v23 }
 0x35d   : > { %2957 = vmatpush3.msra.mxu1 %v1508_v23 }
 0x35e   : > { %2944 = vmatmul.mubr.msk.f32.gmra.mxu1 %vm1242_vm3, %v1221_v16  ;;  %2958 = vmatprep.subr.mxu1 %v3915_v58 }
 0x35f   : > { %2959 = vmatpush3.msra.mxu1 %v3915_v58  ;;  %2962 = vmatprep.mubr.msk.f32.mxu1 %vm1242_vm3, %v3909_v55 }
 0x360   : > { %2960 = vmatprep.subr.mxu1 %v3913_v56 }
 0x361   : > { %2961 = vmatpush3.msra.mxu1 %v3913_v56 }
 0x362   : > { %2963 = vmatmul.mubr.msk.f32.vlgmr.msra.gmra.mxu1 %vm1242_vm3, %v3932_v6 }
 0x363   : > { %2965 = vmatprep.mubr.msk.f32.mxu1 %vm1242_vm3, %v3937_v7 }
 0x366   : > { %2966 = vmatmul.mubr.msk.f32.gmra.mxu1 %vm1242_vm3, %v1217_v10 }
 0x367   : > { %2968 = vmatprep.mubr.msk.f32.mxu1 %vm1242_vm3, %v1218_v11  ;;  %v1733_v11 = vld [vmem:[%s4274_s13 + $0x8] sm:$0xff] }
 0x36a   : > { %2969 = vmatmul.mubr.msk.f32.gmra.mxu1 %vm1242_vm3, %v1219_v13 }
 0x36b   : > { %2971 = vmatprep.mubr.msk.f32.mxu1 %vm1242_vm3, %v1220_v14 }
 0x36e   : > { %2972 = vmatmul.mubr.msk.f32.gmra.mxu1 %vm1242_vm3, %v1221_v16 }
 0x402   : > { %v2908_v24 = vpop.f32.mrf.mxu1 }
 0x404   : > { %v1333_v25 = vpop.f32.mrf.mxu1 }
 0x405   : > { %v1372_v26 = vpack.c.bf16 %v2908_v24, %v1333_v25 }
 0x406   : > { %v2911_v27 = vpop.f32.mrf.mxu1 }
 0x407   : > { %2982 = vmatprep.mubr.msk.bf16.mxu0 %vm1634_vm4, %v1372_v26  ;;  %v1736_v26 = vld [vmem:[%s4274_s13 + $0x20] sm:$0xff] }
 0x408   : > { %v1343_v28 = vpop.f32.mrf.mxu1 }
 0x409   : > { %v1373_v49 = vpack.c.bf16 %v2911_v27, %v1343_v28 }
 0x40a   : > { %v2914_v29 = vpop.f32.mrf.mxu1 }
 0x40c   : > { %v1353_v30 = vpop.f32.mrf.mxu1 }
 0x40d   : > { %v1374_v50 = vpack.c.bf16 %v2914_v29, %v1353_v30  ;;  %v1737_v29 = vld [vmem:[%s4274_s13 + $0x28] sm:$0xff] }
 0x40e   : > { %v2917_v31 = vpop.f32.mrf.mxu1 }
 0x410   : > { %v1363_v32 = vpop.f32.mrf.mxu1 }
 0x411   : > { %v1375_v51 = vpack.c.bf16 %v2917_v31, %v1363_v32 }
 0x412   : > { %v2936_v33 = vpop.f32.mrf.mxu1 }
 0x414   : > { %v1462_v34 = vpop.f32.mrf.mxu1 }
 0x415   : > { %v1501_v46 = vpack.c.bf16 %v2936_v33, %v1462_v34  ;;  %v1738_v34 = vld [vmem:[%s4274_s13 + $0x30] sm:$0xff] }
 0x416   : > { %v2939_v35 = vpop.f32.mrf.mxu1 }
 0x417   : > { %v1648_v48 = vsel %vm1634_vm4, %v1501_v46, 0 }
 0x418   : > { %v1472_v36 = vpop.f32.mrf.mxu1 }
 0x419   : > { %v1502_v44 = vpack.c.bf16 %v2939_v35, %v1472_v36  ;;  %v1739_v35 = vld [vmem:[%s4274_s13 + $0x38] sm:$0xff] }
 0x41a   : > { %v2942_v37 = vpop.f32.mrf.mxu1 }
 0x41b   : > { %v1651_v47 = vsel %vm1634_vm4, %v1502_v44, 0 }
 0x41c   : > { %v1482_v38 = vpop.f32.mrf.mxu1 }
 0x41d   : > { %v1503_v42 = vpack.c.bf16 %v2942_v37, %v1482_v38 }
 0x41e   : > { %v2945_v39 = vpop.f32.mrf.mxu1 }
 0x41f   : > { %v1654_v45 = vsel %vm1634_vm4, %v1503_v42, 0 }
 0x420   : > { %v1492_v40 = vpop.f32.mrf.mxu1 }
 0x421   : > { %v1504_v41 = vpack.c.bf16 %v2945_v39, %v1492_v40 }
 0x422   : > { %v2964_v52 = vpop.f32.mrf.mxu1 }
 0x423   : > { %v1657_v43 = vsel %vm1634_vm4, %v1504_v41, 0  ;;  %3058 = vmatprep.subr.msk.bf16.mxu0 %vm1634_vm4, %v1504_v41 }
 0x424   : > { %2975 = vmatpush3.bf16.xpose.msra.mxu0 %v1657_v43  ;;  %v1591_v53 = vpop.f32.mrf.mxu1 }
 0x425   : > { %3059 = vmatprep.subr.msk.bf16.mxu0 %vm1634_vm4, %v1503_v42  ;;  %v1630_v63 = vpack.c.bf16 %v2964_v52, %v1591_v53 }
 0x426   : > { %v2967_v54 = vpop.f32.mrf.mxu1 }
 0x428   : > { %v1601_v55 = vpop.f32.mrf.mxu1 }
 0x429   : > { %v1631_v62 = vpack.c.bf16 %v2967_v54, %v1601_v55 }
 0x42a   : > { %v2970_v56 = vpop.f32.mrf.mxu1 }
 0x42c   : > { %2977 = vmatpush3.bf16.xpose.msra.mxu0 %v1654_v45  ;;  %v1611_v57 = vpop.f32.mrf.mxu1 }
 0x42d   : > { %3060 = vmatprep.subr.msk.bf16.mxu0 %vm1634_vm4, %v1502_v44  ;;  %v1632_v60 = vpack.c.bf16 %v2970_v56, %v1611_v57 }
 0x42e   : > { %v2973_v58 = vpop.f32.mrf.mxu1 }
 0x430   : > { %v1621_v59 = vpop.f32.mrf.mxu1 }
 0x431   : > { %v1633_v61 = vpack.c.bf16 %v2973_v58, %v1621_v59 }
 0x433   : > { %2990 = vmatprep.subr.bf16.mxu1 %v1633_v61 }
 0x434   : > { %2979 = vmatpush3.bf16.xpose.msra.mxu0 %v1651_v47  ;;  %2991 = vmatpush3.bf16.msra.mxu1 %v1633_v61 }
 0x435   : > { %3061 = vmatprep.subr.msk.bf16.mxu0 %vm1634_vm4, %v1501_v46  ;;  %2992 = vmatprep.subr.bf16.mxu1 %v1632_v60 }
 0x438   : > { %2993 = vmatpush3.bf16.msra.mxu1 %v1632_v60 }
 0x439   : > { %2994 = vmatprep.subr.bf16.mxu1 %v1631_v62 }
 0x43c   : > { %2981 = vmatpush3.bf16.xpose.msra.mxu0 %v1648_v48  ;;  %2995 = vmatpush3.bf16.msra.mxu1 %v1631_v62 }
 0x43d   : > { %3012 = vmatprep.subr.bf16.mxu0 %v3428_v18  ;;  %2996 = vmatprep.subr.bf16.mxu1 %v1630_v63 }
 0x440   : > { %2997 = vmatpush3.bf16.msra.mxu1 %v1630_v63 }
 0x441   : > { %3006 = vmatprep.subr.bf16.mxu1 %v3428_v18 }
 0x443   : > { %2983 = vmatmul.mubr.msk.bf16.vlgmr.msra.gmra.mxu0 %vm1634_vm4, %v1373_v49 }
 0x444   : > { %2986 = vmatprep.mubr.msk.bf16.mxu0 %vm1634_vm4, %v1374_v50 }
 0x44b   : > { %2987 = vmatmul.mubr.msk.bf16.gmra.mxu0 %vm1634_vm4, %v1375_v51 }
 0x44c   : > { %3014 = vmatprep.mubr.msk.bf16.mxu0 %vm3429_vm2, %v3428_v18 }
 0x503   : > { %v2984_v0 = vpop.f32.mrf.mxu0 }
 0x504   : > { %v1726_v5 = vmul.f32 0.35355338, %v2984_v0 }
 0x505   : > { %v1693_v1 = vpop.f32.mrf.mxu0 }
 0x506   : > { %v1724_v6 = vmul.f32 0.35355338, %v1693_v1  ;;  %v1742_v15 = vadd.f32 %v1734_v8, %v1726_v5 }
 0x507   : > { %v2985_v7 = vpop.f32.mrf.mxu0 }
 0x508   : > { %v1740_v9 = vadd.f32 %v1732_v4, %v1724_v6  ;;  %v1727_v12 = vmul.f32 0.35355338, %v2985_v7  ;;  %v1754_v22 = vsel %vm1242_vm3, %v1742_v15, -inf }
 0x509   : > { %v1696_v10 = vpop.f32.mrf.mxu0 }
 0x50a   : > { %v1725_v13 = vmul.f32 0.35355338, %v1696_v10  ;;  %v1748_v14 = vsel %vm1242_vm3, %v1740_v9, -inf  ;;  %v1743_v24 = vadd.f32 %v1735_v17, %v1727_v12 }
 0x50b   : > { %1749 = vmax.xlane.f32.xlu0 %v1748_v14  ;;  %v2988_v16 = vpop.f32.mrf.mxu0 }
 0x50c   : > { %v1741_v19 = vadd.f32 %v1733_v11, %v1725_v13  ;;  %v1730_v27 = vmul.f32 0.35355338, %v2988_v16  ;;  %v1757_v32 = vsel %vm1242_vm3, %v1743_v24, -inf }
 0x50d   : > { %v1709_v20 = vpop.f32.mrf.mxu0 }
 0x50e   : > { %v1728_v21 = vmul.f32 0.35355338, %v1709_v20  ;;  %v1751_v23 = vsel %vm1242_vm3, %v1741_v19, -inf  ;;  %v1746_v39 = vadd.f32 %v1738_v34, %v1730_v27 }
 0x50f   : > { %1755 = vmax.xlane.f32.xlu0 %v1754_v22  ;;  %1752 = vmax.xlane.f32.xlu1 %v1751_v23  ;;  %v2989_v25 = vpop.f32.mrf.mxu0 }
 0x510   : > { %v1731_v30 = vmul.f32 0.35355338, %v2989_v25  ;;  %v1744_v33 = vadd.f32 %v1736_v26, %v1728_v21  ;;  %v1766_v41 = vsel %vm1242_vm3, %v1746_v39, -inf  ;;  %v1918_v26 = vld [vmem:[%s3776_s23 + $0x4] sm:$0xf] }
 0x511   : > { %v1712_v28 = vpop.f32.mrf.mxu0  ;;  %v1928_v27 = vsel %vm1926_vm5, %v1918_v26, 0 }
 0x512   : > { %v1729_v31 = vmul.f32 0.35355338, %v1712_v28  ;;  %v1760_v37 = vsel %vm1242_vm3, %v1744_v33, -inf  ;;  %v1747_v40 = vadd.f32 %v1739_v35, %v1731_v30  ;;  %v1917_v28 = vld [vmem:[%s3776_s23] sm:$0xf] }
 0x513   : > { %1758 = vmax.xlane.f32.xlu0 %v1757_v32 }
 0x514   : > { %v1745_v36 = vadd.f32 %v1737_v29, %v1729_v31  ;;  %v1769_v42 = vsel %vm1242_vm3, %v1747_v40, -inf  ;;  %v1975_v29 = vsel %vm1926_vm5, %v1917_v28, 0  ;;  %v2745_v28 = vld [vmem:[%s4275_s27] ss:$0 sm:$0xff] }
 0x515   : > { %3013 = vmatpush3.bf16.msra.mxu0 %v1975_v29 }
 0x516   : > { %v1763_v38 = vsel %vm1242_vm3, %v1745_v36, -inf  ;;  %3024 = vmatprep.subr.bf16.mxu0 %v3428_v18 }
 0x517   : > { %1761 = vmax.xlane.f32.xlu0 %v1760_v37  ;;  %1764 = vmax.xlane.f32.xlu1 %v1763_v38 }
 0x51b   : > { %1767 = vmax.xlane.f32.xlu0 %v1766_v41  ;;  %1770 = vmax.xlane.f32.xlu1 %v1769_v42 }
 0x594   : > { %v1750_v43 = vpop.xlane.xlu0 %1749 }
 0x595   : > { %v1772_v44 = vsub.f32 %v1740_v9, %v1750_v43 }
 0x597   : > { %v1780_v47 = vmul.f32 1.442695, %v1772_v44 }
 0x598   : > { %v1756_v45 = vpop.xlane.xlu0 %1755  ;;  %v1753_v46 = vpop.xlane.xlu1 %1752 }
 0x599   : > { %v1774_v48 = vsub.f32 %v1742_v15, %v1756_v45  ;;  %v1773_v49 = vsub.f32 %v1741_v19, %v1753_v46  ;;  %3165 = vpow2.f32 %v1780_v47  ;;  %v1920_v46 = vld [vmem:[%s3776_s23 + $0xc] sm:$0xf] }
 0x59b   : > { %v1782_v50 = vmul.f32 1.442695, %v1773_v49  ;;  %v1784_v51 = vmul.f32 1.442695, %v1774_v48 }
 0x59c   : > { %v1759_v52 = vpop.xlane.xlu0 %1758 }
 0x59d   : > { %v1775_v53 = vsub.f32 %v1743_v24, %v1759_v52  ;;  %3167 = vpow2.f32 %v1782_v50  ;;  %v2073_v52 = vsel %vm1926_vm5, %v1920_v46, 0  ;;  %v3151_v46 = vld [vmem:[%s806_s4 + $0x8] sm:$0xff]  }
 0x59e   : > { %3169 = vpow2.f32 %v1784_v51 }
 0x59f   : > { %v1786_v54 = vmul.f32 1.442695, %v1775_v53 }
 0x5a0   : > { %v1762_v55 = vpop.xlane.xlu0 %1761  ;;  %v1765_v56 = vpop.xlane.xlu1 %1764 }
 0x5a1   : > { %3171 = vpow2.f32 %v1786_v54  ;;  %v1776_v57 = vsub.f32 %v1744_v33, %v1762_v55  ;;  %v1777_v58 = vsub.f32 %v1745_v36, %v1765_v56  ;;  %v1919_v55 = vld [vmem:[%s3776_s23 + $0x8] sm:$0xf] }
 0x5a3   : > { %v1788_v59 = vmul.f32 1.442695, %v1776_v57  ;;  %v1790_v60 = vmul.f32 1.442695, %v1777_v58 }
 0x5a4   : > { %v1768_v61 = vpop.xlane.xlu0 %1767  ;;  %v1771_v62 = vpop.xlane.xlu1 %1770 }
 0x5a5   : > { %3173 = vpow2.f32 %v1788_v59  ;;  %v1778_v63 = vsub.f32 %v1746_v39, %v1768_v61  ;;  %v1779_v0 = vsub.f32 %v1747_v40, %v1771_v62  ;;  %v2023_v61 = vsel %vm1926_vm5, %v1919_v55, 0 }
 0x5a6   : > { %3175 = vpow2.f32 %v1790_v60  ;;  %v3166_v5 = vpop.eup %3165 }
 0x5a7   : > { %v1792_v1 = vmul.f32 1.442695, %v1778_v63  ;;  %v1794_v4 = vmul.f32 1.442695, %v1779_v0  ;;  %v1796_v12 = vsel %vm1242_vm3, %v3166_v5, 0.0 }
 0x5a9   : > { %3177 = vpow2.f32 %v1792_v1 }
 0x5aa   : > { %3179 = vpow2.f32 %v1794_v4  ;;  %v3168_v6 = vpop.eup %3167 }
 0x5ab   : > { %v1799_v7 = vsel %vm1242_vm3, %v3168_v6, 0.0  ;;  %v1820_v8 = vpack.c.bf16 %v3168_v6, %v3166_v5  ;;  %v3170_v9 = vpop.eup %3169 }
 0x5ac   : > { %1800 = vadd.xlane.f32.xlu0 %v1799_v7  ;;  %v1802_v15 = vsel %vm1242_vm3, %v3170_v9, 0.0 }
 0x5ad   : > { %2998 = vmatprep.mubr.msk.bf16.mxu1 %vm1242_vm3, %v1820_v8 }
 0x5ae   : > { %v3172_v10 = vpop.eup %3171 }
 0x5af   : > { %v1821_v11 = vpack.c.bf16 %v3172_v10, %v3170_v9  ;;  %v1805_v21 = vsel %vm1242_vm3, %v3172_v10, 0.0 }
 0x5b0   : > { %1797 = vadd.xlane.f32.xlu0 %v1796_v12 }
 0x5b1   : > { %2999 = vmatmul.mubr.msk.bf16.vlgmr.msra.gmra.mxu1 %vm1242_vm3, %v1821_v11 }
 0x5b2   : > { %v3174_v13 = vpop.eup %3173  ;;  %3007 = vmatpush3.bf16.msra.mxu1 %v1928_v27 }
 0x5b3   : > { %v3176_v14 = vpop.eup %3175  ;;  %v1808_v22 = vsel %vm1242_vm3, %v3174_v13, 0.0  ;;  %3018 = vmatprep.subr.bf16.mxu1 %v3428_v18 }
 0x5b4   : > { %v1811_v16 = vsel %vm1242_vm3, %v3176_v14, 0.0  ;;  %v1822_v17 = vpack.c.bf16 %v3176_v14, %v3174_v13  ;;  %1803 = vadd.xlane.f32.xlu0 %v1802_v15 }
 0x5b5   : > { %1812 = vadd.xlane.f32.xlu1 %v1811_v16 }
 0x5b6   : > { %v3178_v19 = vpop.eup %3177  ;;  %3002 = vmatprep.mubr.msk.bf16.mxu1 %vm1242_vm3, %v1822_v17 }
 0x5b7   : > { %v3180_v20 = vpop.eup %3179  ;;  %v1814_v24 = vsel %vm1242_vm3, %v3178_v19, 0.0 }
 0x5b8   : > { %v1823_v23 = vpack.c.bf16 %v3180_v20, %v3178_v19  ;;  %1806 = vadd.xlane.f32.xlu0 %v1805_v21  ;;  %v1817_v25 = vsel %vm1242_vm3, %v3180_v20, 0.0 }
 0x5b9   : > { %1809 = vadd.xlane.f32.xlu1 %v1808_v22 }
 0x5ba   : > { %3003 = vmatmul.mubr.msk.bf16.gmra.mxu1 %vm1242_vm3, %v1823_v23 }
 0x5bb   : > { %3008 = vmatprep.mubr.msk.bf16.mxu1 %vm3429_vm2, %v3428_v18 }
 0x5bd   : > { %1815 = vadd.xlane.f32.xlu1 %v1814_v24 }
 0x5c1   : > { %1818 = vadd.xlane.f32.xlu1 %v1817_v25 }
 0x635   : > { %v1801_v31 = vpop.xlane.xlu0 %1800 }
 0x639   : > { %v1798_v33 = vpop.xlane.xlu0 %1797 }
 0x63a   : > { %3181 = vrcp.f32 %v1798_v33 }
 0x63d   : > { %v1804_v35 = vpop.xlane.xlu0 %1803 }
 0x63e   : > { %v1813_v30 = vpop.xlane.xlu1 %1812 }
 0x641   : > { %v1807_v39 = vpop.xlane.xlu0 %1806 }
 0x642   : > { %v1810_v32 = vpop.xlane.xlu1 %1809 }
 0x643   : > { %3183 = vrcp.f32 %v1810_v32 }
 0x644   : > { %3185 = vrcp.f32 %v1801_v31 }
 0x645   : > { %3187 = vrcp.f32 %v1813_v30 }
 0x646   : > { %v1816_v34 = vpop.xlane.xlu1 %1815 }
 0x647   : > { %v3182_v43 = vpop.eup %3181 }
 0x64a   : > { %v1819_v37 = vpop.xlane.xlu1 %1818 }
 0x64b   : > { %3189 = vrcp.f32 %v1819_v37 }
 0x64c   : > { %3191 = vrcp.f32 %v1807_v39 }
 0x64d   : > { %3193 = vrcp.f32 %v1816_v34 }
 0x64e   : > { %3195 = vrcp.f32 %v1804_v35 }
 0x650   : > { %v3184_v44 = vpop.eup %3183 }
 0x651   : > { %v3186_v50 = vpop.eup %3185 }
 0x652   : > { %v3188_v53 = vpop.eup %3187 }
 0x658   : > { %v3190_v58 = vpop.eup %3189 }
 0x659   : > { %v3192_v62 = vpop.eup %3191 }
 0x65a   : > { %v3194_v0 = vpop.eup %3193 }
 0x65b   : > { %v3196_v5 = vpop.eup %3195 }
 0x671   : > { %v3000_v36 = vpop.f32.mrf.mxu1 }
 0x672   : > { %v1906_v6 = vmul.f32 %v3196_v5, %v3000_v36  ;;  %v3155_v5 = vld [vmem:[%s3832_s17 + $0x28] sm:$0xff]  }
 0x673   : > { %v1870_v38 = vpop.f32.mrf.mxu1 }
 0x674   : > { %v1902_v47 = vmul.f32 %v3182_v43, %v1870_v38 }
 0x675   : > { %v3001_v40 = vpop.f32.mrf.mxu1 }
 0x676   : > { %v1908_v63 = vmul.f32 %v3192_v62, %v3001_v40 }
 0x677   : > { %v1873_v41 = vpop.f32.mrf.mxu1 }
 0x678   : > { %v1904_v56 = vmul.f32 %v3186_v50, %v1873_v41 }
 0x67a   : > { %v3004_v42 = vpop.f32.mrf.mxu1 }
 0x67b   : > { %v1914_v1 = vmul.f32 %v3194_v0, %v3004_v42 }
 0x67c   : > { %v1886_v45 = vpop.f32.mrf.mxu1 }
 0x67d   : > { %v1910_v48 = vmul.f32 %v3184_v44, %v1886_v45  ;;  %v2018_v7 = vpack.c.bf16 %v1914_v1, %v1906_v6  ;;  %v3156_v6 = vld [vmem:[%s3832_s17 + $0x20] sm:$0xff]  }
 0x67e   : > { %v3005_v49 = vpop.f32.mrf.mxu1 }
 0x67f   : > { %v1921_v51 = vpack.c.bf16 %v1910_v48, %v1902_v47  ;;  %v1916_v59 = vmul.f32 %v3190_v58, %v3005_v49  ;;  %v3152_v47 = vld [vmem:[%s806_s4] sm:$0xff]   ;;  %v3153_v48 = vld [vmem:[%s3832_s17 + $0x38] sm:$0xff]   ;;  %s2418_s4 = sshll.u32 %s3433_s15, 4  ;;  %s2419_s4 = int_to_ptr.vmem [resolvable:$true] %s2418_s4 }
 0x680   : > { %v1889_v54 = vpop.f32.mrf.mxu1  ;;  %p3354_p8 = scmp.lt.s32.totalorder %s2419_s4, %s2419_s4 }
 0x681   : > { %v1912_v57 = vmul.f32 %v3188_v53, %v1889_v54  ;;  %3015 = vmatmul.mubr.msk.bf16.vlgmr.msra.gmra.mxu0 %vm1634_vm4, %v1921_v51  ;;  %v2068_v4 = vpack.c.bf16 %v1916_v59, %v1908_v63 }
 0x682   : > { %3025 = vmatpush3.bf16.msra.mxu0 %v2073_v52  ;;  %3026 = vmatprep.mubr.msk.bf16.mxu0 %vm3429_vm2, %v3428_v18 }
 0x683   : > { %v1922_v60 = vpack.c.bf16 %v1912_v57, %v1904_v56  ;;  %3038 = vmatprep.subr.bf16.mxu0 %v3428_v18  ;;  %v2746_v57 = vld [vmem:[%s4277_s28] ss:$0 sm:$0xff] }
 0x685   : > { %3009 = vmatmul.mubr.msk.bf16.vlgmr.msra.gmra.mxu1 %vm1634_vm4, %v1922_v60 }
 0x686   : > { %3019 = vmatpush3.bf16.msra.mxu1 %v2023_v61  ;;  %3020 = vmatprep.mubr.msk.bf16.mxu1 %vm3429_vm2, %v3428_v18  ;;  %v2747_v61 = vld [vmem:[%s4279_s10] ss:$0 sm:$0xff] }
 0x687   : > { %3030 = vmatprep.subr.bf16.mxu1 %v3428_v18 }
 0x689   : > { %3027 = vmatmul.mubr.msk.bf16.vlgmr.msra.gmra.mxu0 %vm1634_vm4, %v2068_v4  ;;  %v3154_v4 = vld [vmem:[%s3832_s17 + $0x30] sm:$0xff]  }
 0x68a   : > { %3054 = vmatprep.mubr.msk.bf16.mxu0 %vm3429_vm2, %v3428_v18  ;;  %3039 = vmatpush3.bf16.msra.mxu0 %v3153_v48 }
 0x68b   : > { %3040 = vmatprep.subr.bf16.mxu0 %v3428_v18 }
 0x68d   : > { %3021 = vmatmul.mubr.msk.bf16.vlgmr.msra.gmra.mxu1 %vm1634_vm4, %v2018_v7  ;;  %v3157_v7 = vld [vmem:[%s3832_s17 + $0x18] sm:$0xff]  }
 0x68e   : > { %3034 = vmatprep.mubr.msk.bf16.mxu1 %vm3429_vm2, %v3428_v18  ;;  %3031 = vmatpush3.bf16.msra.mxu1 %v3151_v46 }
 0x68f   : > { %3032 = vmatprep.subr.bf16.mxu1 %v3428_v18  ;;  %3041 = vmatpush3.bf16.msra.mxu0 %v3154_v4 }
 0x690   : > { %3042 = vmatprep.subr.bf16.mxu0 %v3428_v18 }
 0x692   : > { %3033 = vmatpush3.bf16.msra.mxu1 %v3152_v47 }
 0x693   : > { %3043 = vmatpush3.bf16.msra.mxu0 %v3155_v5 }
 0x694   : > { %3044 = vmatprep.subr.bf16.mxu0 %v3428_v18 }
 0x697   : > { %3045 = vmatpush3.bf16.msra.mxu0 %v3156_v6 }
 0x698   : > { %3046 = vmatprep.subr.bf16.mxu0 %v3428_v18 }
 0x69b   : > { %3047 = vmatpush3.bf16.msra.mxu0 %v3157_v7 }
 0x69c   : > { %3048 = vmatprep.subr.bf16.mxu0 %v3428_v18 }
 0x741   : > { %v2011_v8 = vpop.f32.mrf.mxu0 }
 0x743   : > { %v3016_v9 = vpop.f32.mrf.mxu0 }
 0x744   : > { %v3159_v9 = vld [vmem:[%s3832_s17 + $0x8] sm:$0xff]  }
 0x745   : > { %v1964_v10 = vpop.f32.mrf.mxu1  ;;  %v2014_v11 = vpop.f32.mrf.mxu0 }
 0x746   : > { %v2012_v19 = vadd.f32 %v2011_v8, %v1964_v10  ;;  %v3158_v8 = vld [vmem:[%s3832_s17 + $0x10] sm:$0xff]   ;;  %v3160_v10 = vld [vmem:[%s3832_s17] sm:$0xff]  }
 0x747   : > { %v3010_v12 = vpop.f32.mrf.mxu1  ;;  %v3017_v13 = vpop.f32.mrf.mxu0  ;;  %3049 = vmatpush3.bf16.msra.mxu0 %v3158_v8 }
 0x748   : > { %3050 = vmatprep.subr.bf16.mxu0 %v3428_v18 }
 0x749   : > { %v1967_v14 = vpop.f32.mrf.mxu1  ;;  %v2109_v15 = vpop.f32.mrf.mxu0 }
 0x74a   : > { %v2015_v25 = vadd.f32 %v2014_v11, %v1967_v14  ;;  %v2748_v11 = vld [vmem:[%s944_s18] ss:$0 sm:$0xff] }
 0x74b   : > { %v3011_v16 = vpop.f32.mrf.mxu1  ;;  %v3028_v17 = vpop.f32.mrf.mxu0  ;;  %3051 = vmatpush3.bf16.msra.mxu0 %v3159_v9 }
 0x74c   : > { %3052 = vmatprep.subr.bf16.mxu0 %v3428_v18 }
 0x74d   : > { %v2059_v20 = vpop.f32.mrf.mxu1  ;;  %v2112_v21 = vpop.f32.mrf.mxu0 }
 0x74e   : > { %v2066_v22 = vadd.f32 %v2059_v20, %v2012_v19 }
 0x74f   : > { %v3022_v23 = vpop.f32.mrf.mxu1  ;;  %v3029_v24 = vpop.f32.mrf.mxu0  ;;  %3053 = vmatpush3.bf16.msra.mxu0 %v3160_v10 }
 0x750   : > { %v2116_v26 = vadd.f32 %v2109_v15, %v2066_v22 }
 0x751   : > { %v2062_v27 = vpop.f32.mrf.mxu1 }
 0x752   : > { %v2118_v29 = vadd.f32 %v2116_v26, %v3845_v2  ;;  %v2067_v30 = vadd.f32 %v2062_v27, %v2015_v25 }
 0x753   : > { %v3023_v31 = vpop.f32.mrf.mxu1 }
 0x754   : > { %v2117_v32 = vadd.f32 %v2112_v21, %v2067_v30  ;;  %v4085_v33 = vadd.f32 %v2745_v28, %v2118_v29  ;;  %v2752_v29 = vld [vmem:[%s952_s9] ss:$0 sm:$0xff] }
 0x756   : > { %v2119_v34 = vadd.f32 %v2117_v32, %v3847_v3  ;;  %v2131_v35 = vsel %vm973_vm1, %v4085_v33, 0.0 }
 0x757   : > { %2132 = vadd.xlane.f32.xlu0 %v2131_v35 }
 0x758   : > { %v4090_v36 = vadd.f32 %v2745_v28, %v2119_v34 }
 0x75a   : > { %v2134_v37 = vsel %vm973_vm1, %v4090_v36, 0.0 }
 0x75b   : > { %2135 = vadd.xlane.f32.xlu1 %v2134_v37 }
 0x7e0   : > { %v2133_v2 = vpop.xlane.xlu0 %2132 }
 0x7e1   : > { %v2137_v38 = vmul.f32 0.03125, %v2133_v2 }
 0x7e3   : > { %v2139_v39 = vsub.f32 %v4085_v33, %v2137_v38 }
 0x7e4   : > { %v2136_v40 = vpop.xlane.xlu1 %2135 }
 0x7e5   : > { %v2138_v41 = vmul.f32 0.03125, %v2136_v40  ;;  %v2141_v3 = vmul.f32 %v2139_v39, %v2139_v39 }
 0x7e7   : > { %v2140_v42 = vsub.f32 %v4090_v36, %v2138_v41  ;;  %v2143_v43 = vsel %vm973_vm1, %v2141_v3, 0.0 }
 0x7e8   : > { %2144 = vadd.xlane.f32.xlu0 %v2143_v43 }
 0x7e9   : > { %v2142_v44 = vmul.f32 %v2140_v42, %v2140_v42 }
 0x7eb   : > { %v2146_v45 = vsel %vm973_vm1, %v2142_v44, 0.0 }
 0x7ec   : > { %2147 = vadd.xlane.f32.xlu1 %v2146_v45 }
 0x871   : > { %v2145_v49 = vpop.xlane.xlu0 %2144 }
 0x872   : > { %v2149_v50 = vmul.f32 0.03125, %v2145_v49 }
 0x874   : > { %v2151_v51 = vadd.f32 1e-05, %v2149_v50 }
 0x875   : > { %v2148_v52 = vpop.xlane.xlu1 %2147 }
 0x876   : > { %3197 = vrsqrt.f32 %v2151_v51  ;;  %v2150_v53 = vmul.f32 0.03125, %v2148_v52 }
 0x878   : > { %v2152_v54 = vadd.f32 1e-05, %v2150_v53 }
 0x87a   : > { %3199 = vrsqrt.f32 %v2152_v54 }
 0x883   : > { %v3198_v55 = vpop.eup %3197 }
 0x884   : > { %v2155_v56 = vmul.f32 %v3198_v55, %v2139_v39  ;;  %v2761_v55 = vld [vmem:[%s955_s8] ss:$0 sm:$0xff]  ;;  %s3347_s8 = scalar_lea.vmem %s2419_s4, 256 }
 0x885   : > { %p3348_p0 = scmp.ne.s32.totalorder %s2419_s4, %s3347_s8  ;;  %p3355_p9 = scmp.lt.s32.totalorder %s3347_s8, %s3347_s8 }
 0x886   : > { %v2163_v60 = vmul.f32 %v2746_v57, %v2155_v56 }
 0x887   : > { %v3200_v58 = vpop.eup %3199  ;;  %p3349_p6 = pnand %p3348_p0, %p3098_p13  ;;  %p3356_p12 = por %p3355_p9, %p3354_p8 }
 0x888   : > { %v2156_v59 = vmul.f32 %v3200_v58, %v2140_v42  ;;  %v2171_v63 = vadd.f32 %v2747_v61, %v2163_v60 }
 0x889   : > { %p3350_p4 = pneg %p3349_p6 }
 0x88a   : > { %v2164_v62 = vmul.f32 %v2746_v57, %v2156_v59  ;;  %v2762_v57 = vld [vmem:[%s958_s2] ss:$0 sm:$0xff] }
 0x88b   : > { %p3357_p1 = pnand %p3356_p12, %p3350_p4 }
 0x88c   : > { %v2172_v0 = vadd.f32 %v2747_v61, %v2164_v62 }
 0x88e   : > { %v2173_v1 = vpack.c.bf16 %v2172_v0, %v2171_v63 }
 0x890   : > { %3035 = vmatmul.mubr.msk.bf16.vlgmr.msra.gmra.mxu1 %vm973_vm1, %v2173_v1 }
 0x950   : > { %v2234_v12 = vpop.f32.mrf.mxu1 }
 0x951   : > { %v2235_v13 = vadd.f32 %v2748_v11, %v2234_v12 }
 0x952   : > { %v3036_v14 = vpop.f32.mrf.mxu1 }
 0x953   : > { %v2243_v15 = vmul.f32 0.70710677, %v2235_v13  ;;  %v2241_v23 = vmul.f32 0.5, %v2235_v13 }
 0x954   : > { %v2237_v16 = vpop.f32.mrf.mxu1 }
 0x955   : > { %3201 = verf.f32 %v2243_v15  ;;  %v2238_v17 = vadd.f32 %v2748_v11, %v2237_v16 }
 0x956   : > { %v3037_v19 = vpop.f32.mrf.mxu1 }
 0x957   : > { %v2244_v20 = vmul.f32 0.70710677, %v2238_v17  ;;  %v2242_v24 = vmul.f32 0.5, %v2238_v17 }
 0x959   : > { %3203 = verf.f32 %v2244_v20 }
 0x962   : > { %v3202_v21 = vpop.eup %3201 }
 0x963   : > { %v2247_v18 = vadd.f32 1.0, %v3202_v21 }
 0x965   : > { %v2249_v26 = vmul.f32 %v2247_v18, %v2241_v23 }
 0x966   : > { %v3204_v22 = vpop.eup %3203 }
 0x967   : > { %v2248_v25 = vadd.f32 1.0, %v3204_v22 }
 0x969   : > { %v2250_v27 = vmul.f32 %v2248_v25, %v2242_v24 }
 0x96b   : > { %v2251_v28 = vpack.c.bf16 %v2250_v27, %v2249_v26 }
 0x96d   : > { %3055 = vmatmul.mubr.bf16.vlgmr.msra.gmra.mxu0 %v2251_v28 }
 0xa2d   : > { %v2357_v30 = vpop.f32.mrf.mxu0 }
 0xa2e   : > { %v2358_v31 = vadd.f32 %v2752_v29, %v2357_v30 }
 0xa2f   : > { %v3056_v32 = vpop.f32.mrf.mxu0 }
 0xa30   : > { %v2364_v34 = vadd.f32 %v2358_v31, %v4085_v33 }
 0xa31   : > { %v2360_v35 = vpop.f32.mrf.mxu0 }
 0xa32   : > { %v2361_v37 = vadd.f32 %v2752_v29, %v2360_v35  ;;  %v2368_v2 = vsel %vm973_vm1, %v2364_v34, 0.0 }
 0xa33   : > { %2369 = vadd.xlane.f32.xlu0 %v2368_v2  ;;  %v3057_v38 = vpop.f32.mrf.mxu0 }
 0xa34   : > { %v2365_v39 = vadd.f32 %v2361_v37, %v4090_v36 }
 0xa36   : > { %v2371_v40 = vsel %vm973_vm1, %v2365_v39, 0.0 }
 0xa37   : > { %2372 = vadd.xlane.f32.xlu1 %v2371_v40 }
 0xabc   : > { %v2370_v41 = vpop.xlane.xlu0 %2369 }
 0xabd   : > { %v2374_v3 = vmul.f32 0.03125, %v2370_v41 }
 0xabf   : > { %v2376_v42 = vsub.f32 %v2364_v34, %v2374_v3 }
 0xac0   : > { %v2373_v43 = vpop.xlane.xlu1 %2372 }
 0xac1   : > { %v2375_v44 = vmul.f32 0.03125, %v2373_v43  ;;  %v2378_v45 = vmul.f32 %v2376_v42, %v2376_v42 }
 0xac3   : > { %v2377_v46 = vsub.f32 %v2365_v39, %v2375_v44  ;;  %v2380_v33 = vsel %vm973_vm1, %v2378_v45, 0.0 }
 0xac4   : > { %2381 = vadd.xlane.f32.xlu0 %v2380_v33 }
 0xac5   : > { %v2379_v47 = vmul.f32 %v2377_v46, %v2377_v46 }
 0xac7   : > { %v2383_v48 = vsel %vm973_vm1, %v2379_v47, 0.0 }
 0xac8   : > { %2384 = vadd.xlane.f32.xlu1 %v2383_v48 }
 0xb4d   : > { %v2382_v36 = vpop.xlane.xlu0 %2381 }
 0xb4e   : > { %v2386_v49 = vmul.f32 0.03125, %v2382_v36 }
 0xb50   : > { %v2388_v50 = vadd.f32 1e-05, %v2386_v49 }
 0xb51   : > { %v2385_v51 = vpop.xlane.xlu1 %2384 }
 0xb52   : > { %3205 = vrsqrt.f32 %v2388_v50  ;;  %v2387_v52 = vmul.f32 0.03125, %v2385_v51 }
 0xb54   : > { %v2389_v53 = vadd.f32 1e-05, %v2387_v52 }
 0xb56   : > { %3207 = vrsqrt.f32 %v2389_v53 }
 0xb5f   : > { %v3206_v54 = vpop.eup %3205 }
 0xb60   : > { %v2392_v56 = vmul.f32 %v3206_v54, %v2376_v42 }
 0xb62   : > { %v2400_v58 = vmul.f32 %v2761_v55, %v2392_v56 }
 0xb63   : > { %v3208_v59 = vpop.eup %3207 }
 0xb64   : > { %v2393_v60 = vmul.f32 %v3208_v59, %v2377_v46  ;;  %v2408_v61 = vadd.f32 %v2762_v57, %v2400_v58 }
 0xb66   : > { %v2401_v62 = vmul.f32 %v2761_v55, %v2393_v60  ;;  %2410 = vst.msk [vmem:[#allocation11] sm:$0xff] %vm973_vm1, %v2408_v61 }
 0xb68   : > { %v2409_v63 = vadd.f32 %v2762_v57, %v2401_v62 }
 0xb6a   : > { %2411 = vst.msk [vmem:[#allocation11 + $0x8] sm:$0xff] %vm973_vm1, %v2409_v63 }
 0xb6b   : > { %3360 = shalt.err (!%p3357_p1)
}
 0xb6c   : > { %s3434_s7 = smov 128   ;;  %s3435_s2 = smov 8  }
 0xb6d   : > { %s4284_s25 = sld [smem:[#allocation35_spill]] }
 0xb73   : > { %3075 = dma.vmem_to_hbm [thread:$0]  (%p3098_p13), %s2419_s4, 256, %s4284_s25, [#allocation4], %s3434_s7, %s3434_s7, %s3435_s2  }
 0xb74   : > { %3400 = dma.done.wait (%p3098_p13), [#allocation4], 256  }
 0xb75   : > { %3402 = vsyncadd (%p3098_p13), [#allocation4], 4294967040 }
 0xb76 PF: > { %s4285_s24 = sld [smem:[#allocation17_spill]]  ;;  %s4288_s1 = smov %s3409_s22 }
 0xb77   : > { %s4286_s3 = sld [smem:[#allocation16_spill]] }
 0xb78   : > { %s4287_s23 = sld [smem:[#allocation18_spill]] }
 0xb7c   : > { %p35_p7 = scmp.ge.s32.totalorder %s4285_s24, 4  }
 0xb7d   : > { %s4289_s22 = smov %s4286_s3 }
 0xb7e   :  { %37 = sbr.rel (!%p35_p7) target bundleno = 25 (0x19), region = 220 }
 0xb83   :  { %2434 = vsyncpa [#allocation3], 1 }
 0xb84   :  { %2436 = vsyncpa [#allocation3 + $0x1], 1 }
 0xb85   :  { %2437 = vsyncpa [#allocation6], 1 }
 0xb86   :  { %2439 = vsyncpa [#allocation6 + $0x1], 1 }
 0xb87   :  { %2440 = vsyncpa [#allocation9], 1 }
 0xb88   :  { %2442 = vsyncpa [#allocation9 + $0x1], 1 }
 0xb89   :  { %2443 = vsyncpa [#allocation4], 1 }
 0xb8a   :  { %2445 = vsyncpa [#allocation4 + $0x1], 1 }

</bundles_post_ra>
